<compile_context>
chip_gen: v5e
topology: v5e:2x2
jax: 0.10.0
libtpu: 0.0.40
codegen_flags: <defaults>
</compile_context>

<pallas_src>
import functools

import jax
import jax.numpy as jnp
from jax import lax
from jax.experimental import pallas as pl
from jax.experimental.pallas import tpu as pltpu


def ext_mem_kernel(q_ref, qa_ref, ms_ref, mem0_ref, we_ref, be_ref, wa_ref, ba_ref,
                   out_ref, read_sc, *, seq_len, t_chunk):
    T = seq_len
    Bb = out_ref.shape[0]
    M, D = ms_ref.shape

    q2 = q_ref[...]                           # (Bb*T, D) bf16
    qa2 = qa_ref[...]                         # (Bb*T, D) bf16
    ms = ms_ref[...]                          # (M, D)    bf16

    # ---- memory addressing: w = softmax(q @ MS^T) over M (one MXU matmul) ----
    logits = lax.dot_general(q2, ms, (((1,), (1,)), ((), ())),
                             preferred_element_type=jnp.float32)      # (Bb*T, M) f32
    logits = logits - jnp.max(logits, axis=-1, keepdims=True)
    ex = jnp.exp(logits)
    w2 = ex / jnp.sum(ex, axis=-1, keepdims=True)                     # (Bb*T, M) f32

    # ---- erase / add gates: two (Bb*T, D) @ (D, D) MXU matmuls, f32 accum ----
    e2 = jax.nn.sigmoid(
        jnp.dot(qa2, we_ref[...], preferred_element_type=jnp.float32) + be_ref[...])
    a2 = jnp.tanh(
        jnp.dot(qa2, wa_ref[...], preferred_element_type=jnp.float32) + ba_ref[...])

    # Live-value batch/time views (leading-dim split only; lane dim untouched).
    w3 = w2.reshape(Bb, T, M)
    e3 = e2.reshape(Bb, T, D)
    a3 = a2.reshape(Bb, T, D)

    # Memory state stays f32 across the whole recurrence.
    mem = jnp.broadcast_to(mem0_ref[...].astype(jnp.float32)[None], (Bb, M, D))

    # ---- sequential recurrence, vectorized over the batch tile ----
    # Outer products hoisted off the serial chain, in T-chunks to bound vregs.
    for t0 in range(0, T, t_chunk):
        tc = min(t_chunk, T - t0)
        w_c = w3[:, t0:t0 + tc, :]                                    # (Bb, tc, M)
        e_c = e3[:, t0:t0 + tc, :]                                    # (Bb, tc, D)
        a_c = a3[:, t0:t0 + tc, :]                                    # (Bb, tc, D)
        om_we = 1.0 - w_c[:, :, :, None] * e_c[:, :, None, :]         # (Bb, tc, M, D)
        w_a = w_c[:, :, :, None] * a_c[:, :, None, :]                 # (Bb, tc, M, D)

        for i in range(tc):                                           # static unroll
            t = t0 + i
            wt = w_c[:, i, :, None]                                   # (Bb, M, 1)
            # read BEFORE update: out[b,t,:] = sum_m w[b,t,m] * mem[b,m,:]
            # (off the mem-update chain; written into a lane-dense scratch slab)
            read_sc[:, t * D:(t + 1) * D] = jnp.sum(wt * mem, axis=1)
            # serial critical path: one multiply + one add per step
            mem = mem * om_we[:, i] + w_a[:, i]

    # single unmasked, lane-dense bulk store of the (Bb, T*D) output block
    out_ref[...] = read_sc[...].astype(out_ref.dtype)


def _vmem_bytes_estimate(b_blk, T, M, D, t_chunk):
    """Rough per-grid-step VMEM footprint (double-buffered blocks + live values)."""
    bt = b_blk * T
    in_bf16 = 2 * (bt * D * 2) * 2                      # q + qa blocks, x2 buffers
    out_f32 = (b_blk * T * D * 4) * 2                   # output block, x2 buffers
    invar = 2 * (2 * M * D * 2 + M * D * 4 + 2 * D * D * 2 + 2 * D * 4)
    scratch = b_blk * T * D * 4                         # read_sc
    live = (2 * b_blk * t_chunk * M * D * 4             # OmWE / WA chunk
            + b_blk * M * D * 4                         # mem state
            + b_blk * T * (M + 2 * D) * 4               # w / e / a
            + 3 * bt * D * 4)                           # matmul temporaries
    return in_bf16 + out_f32 + invar + scratch + live


def _pick_t_chunk(b_blk, T, M, D, *, vreg_budget_bytes=128 * 1024):
    """Chunk the outer-product precompute so its vreg-padded footprint stays
    well under the 64-vreg (256 KiB) register file."""
    lanes = -(-D // 128) * 128
    subl = -(-M // 8) * 8
    per_t = 2 * b_blk * subl * lanes * 4
    return max(1, min(T, vreg_budget_bytes // max(per_t, 1)))


def _pick_b_blk(B, T, M, D, *, target_rows=256, prefer_multi_step=True,
                vmem_cap_bytes=40 * 1024 * 1024):
    """Largest batch tile that (a) keeps >=2 grid steps when possible (v7x has
    two TensorCores), (b) fits a ~40 MiB VMEM cap (v7x-safe), while pushing
    b_blk*T toward `target_rows` MXU rows per step."""
    divisors = [d for d in range(1, B + 1) if B % d == 0]
    cands = [d for d in divisors if B // d >= 2] if (prefer_multi_step and B >= 2) else list(divisors)
    if not cands:
        cands = divisors
    fits = [d for d in cands
            if _vmem_bytes_estimate(d, T, M, D, min(T, 16)) <= vmem_cap_bytes]
    if not fits:
        fits = [min(cands)]
    big = [d for d in fits if d * T >= target_rows]
    return min(big) if big else max(fits)


def ext_mem_forward(q, qa, MS, dy_mem, we_t, be, wa_t, ba, *,
                    b_blk=None, matmul_dtype=jnp.bfloat16):
    B, T, D = q.shape
    M = MS.shape[0]
    if b_blk is None:
        b_blk = _pick_b_blk(B, T, M, D)
    assert B % b_blk == 0, (B, b_blk)
    G = B // b_blk
    t_chunk = _pick_t_chunk(b_blk, T, M, D)
    est = _vmem_bytes_estimate(b_blk, T, M, D, t_chunk)
    vmem_limit = int(min(48 * 2**20, max(32 * 2**20, 2 * est)))

    # bf16 MXU operands (halves q/qa/weight DMA); biases & initial memory stay f32.
    q3 = q.astype(matmul_dtype).reshape(G, b_blk * T, D)
    qa3 = qa.astype(matmul_dtype).reshape(G, b_blk * T, D)
    ms_c = MS.astype(matmul_dtype)
    we_c = we_t.astype(matmul_dtype)
    wa_c = wa_t.astype(matmul_dtype)

    kernel = functools.partial(ext_mem_kernel, seq_len=T, t_chunk=t_chunk)

    out = pl.pallas_call(
        kernel,
        out_shape=jax.ShapeDtypeStruct((G, b_blk, T * D), q.dtype),
        grid_spec=pltpu.PrefetchScalarGridSpec(
            num_scalar_prefetch=0,
            grid=(G,),
            in_specs=[
                pl.BlockSpec((None, b_blk * T, D), lambda i: (i, 0, 0)),   # q  (flattened)
                pl.BlockSpec((None, b_blk * T, D), lambda i: (i, 0, 0)),   # qa (flattened)
                # Grid-invariant blocks (constant index map -> fetched once).
                # For large D on v7x, single-buffer these (pl.Buffered(1)) to
                # reclaim VMEM headroom; they are tiny at these shapes.
                pl.BlockSpec((M, D), lambda i: (0, 0)),                    # MS
                pl.BlockSpec((M, D), lambda i: (0, 0)),                    # dy_mem (init state)
                pl.BlockSpec((D, D), lambda i: (0, 0)),                    # We (pre-transposed)
                pl.BlockSpec((1, D), lambda i: (0, 0)),                    # be
                pl.BlockSpec((D, D), lambda i: (0, 0)),                    # Wa (pre-transposed)
                pl.BlockSpec((1, D), lambda i: (0, 0)),                    # ba
            ],
            out_specs=pl.BlockSpec((None, b_blk, T * D), lambda i: (i, 0, 0)),
            scratch_shapes=[
                pltpu.VMEM((b_blk, T * D), jnp.float32),   # lane-dense read slab
            ],
        ),
        compiler_params=pltpu.CompilerParams(
            dimension_semantics=("parallel",),
            vmem_limit_bytes=vmem_limit,
        ),
    )(q3, qa3, ms_c, dy_mem, we_c, be, wa_c, ba)

    return out.reshape(B, T, D)


def ext_mem_reference(q, qa, MS, dy_mem, we_t, be, wa_t, ba):
    """Pure-JAX replica of the PyTorch forward (for verification)."""
    B, T, D = q.shape
    w = jax.nn.softmax(jnp.einsum('btd,md->btm', q, MS), axis=-1)   # (B, T, M)
    e = jax.nn.sigmoid(qa @ we_t + be)                              # (B, T, D)
    a = jnp.tanh(qa @ wa_t + ba)                                    # (B, T, D)
    mem = jnp.broadcast_to(dy_mem, (B,) + dy_mem.shape)             # (B, M, D)
    outs = []
    for t in range(T):
        wt = w[:, t]                                                # (B, M)
        outs.append(jnp.einsum('bm,bmd->bd', wt, mem))              # read before update
        mem = (mem * (1.0 - wt[..., None] * e[:, t][:, None, :])
               + wt[..., None] * a[:, t][:, None, :])
    return jnp.stack(outs, axis=1)                                  # (B, T, D)


if __name__ == "__main__":
    B, T, D, M = 4, 8, 32, 16   # batch, seq_len, d_model, m_size

    key = jax.random.PRNGKey(0)
    k_q, k_qa, k_ms, k_mem, k_we, k_be, k_wa, k_ba = jax.random.split(key, 8)

    q = jax.random.normal(k_q, (B, T, D), dtype=jnp.float32)
    qa = jax.random.normal(k_qa, (B, T, D), dtype=jnp.float32)
    MS = jax.random.normal(k_ms, (M, D), dtype=jnp.float32)

    # dy_mem ~ kaiming_normal_ on (m_size, d_model): std = sqrt(2 / fan_in=d_model)
    dy_mem = jax.random.normal(k_mem, (M, D), dtype=jnp.float32) * jnp.sqrt(2.0 / D)

    # nn.Linear(d_model, d_model) default init: U(-1/sqrt(in), 1/sqrt(in)).
    # Stored pre-transposed as (D_in, D_out) so kernel does x @ W + b.
    bound = 1.0 / jnp.sqrt(D)
    we_t = jax.random.uniform(k_we, (D, D), jnp.float32, -bound, bound)
    be = jax.random.uniform(k_be, (1, D), jnp.float32, -bound, bound)
    wa_t = jax.random.uniform(k_wa, (D, D), jnp.float32, -bound, bound)
    ba = jax.random.uniform(k_ba, (1, D), jnp.float32, -bound, bound)

    out = ext_mem_forward(q, qa, MS, dy_mem, we_t, be, wa_t, ba)
    out = jax.block_until_ready(out)

    # The kernel feeds the MXU bf16 operands (f32 accumulation).  Round the
    # matmul operands of the f32 reference the same way so the comparison
    # isolates kernel error from input quantization; tolerance relaxed vs. the
    # pure-f32 version accordingly.
    rd = lambda x: x.astype(jnp.bfloat16).astype(jnp.float32)
    ref = ext_mem_reference(rd(q), rd(qa), rd(MS), dy_mem, rd(we_t), be, rd(wa_t), ba)

    assert out.shape == (B, T, D)
    max_err = jnp.max(jnp.abs(out - ref))
    assert jnp.allclose(out, ref, rtol=1e-2, atol=1e-2), f"max abs err = {max_err}"

    print("KERNEL_OK")
</pallas_src>

<mosaic_0001>
module attributes {stable_mosaic.version = 11 : i64} {
  func.func @ext_mem_kernel(%arg0: i32, %arg1: memref<1x16x32xbf16, #tpu.memory_space<vmem>>, %arg2: memref<1x16x32xbf16, #tpu.memory_space<vmem>>, %arg3: memref<16x32xbf16, #tpu.memory_space<vmem>>, %arg4: memref<16x32xf32, #tpu.memory_space<vmem>>, %arg5: memref<32x32xbf16, #tpu.memory_space<vmem>>, %arg6: memref<1x32xf32, #tpu.memory_space<vmem>>, %arg7: memref<32x32xbf16, #tpu.memory_space<vmem>>, %arg8: memref<1x32xf32, #tpu.memory_space<vmem>>, %arg9: memref<1x2x256xf32, #tpu.memory_space<vmem>>, %arg10: memref<2x256xf32, #tpu.memory_space<vmem>>) attributes {dimension_semantics = [#tpu.dimension_semantics<parallel>], iteration_bounds = array<i64: 2>, scalar_prefetch = 0 : i64, scratch_operands = 1 : i64, tpu.core_type = #tpu.core_type<tc>, window_params = [{transform_indices = @transform_0, window_bounds = array<i64: 1, 16, 32>}, {transform_indices = @transform_1, window_bounds = array<i64: 1, 16, 32>}, {pipeline_mode = #tpu.pipeline_mode<synchronous>, transform_indices = @transform_2, window_bounds = array<i64: 16, 32>}, {pipeline_mode = #tpu.pipeline_mode<synchronous>, transform_indices = @transform_3, window_bounds = array<i64: 16, 32>}, {pipeline_mode = #tpu.pipeline_mode<synchronous>, transform_indices = @transform_4, window_bounds = array<i64: 32, 32>}, {pipeline_mode = #tpu.pipeline_mode<synchronous>, transform_indices = @transform_5, window_bounds = array<i64: 1, 32>}, {pipeline_mode = #tpu.pipeline_mode<synchronous>, transform_indices = @transform_6, window_bounds = array<i64: 32, 32>}, {pipeline_mode = #tpu.pipeline_mode<synchronous>, transform_indices = @transform_7, window_bounds = array<i64: 1, 32>}, {transform_indices = @transform_8, window_bounds = array<i64: 1, 2, 256>}]} {
    %c0 = arith.constant 0 : index
    %c0_0 = arith.constant 0 : index
    %c0_1 = arith.constant 0 : index
    %0 = vector.load %arg1[%c0, %c0_0, %c0_1] : memref<1x16x32xbf16, #tpu.memory_space<vmem>>, vector<1x16x32xbf16>
    %1 = vector.shape_cast %0 : vector<1x16x32xbf16> to vector<16x32xbf16>
    %c0_2 = arith.constant 0 : index
    %c0_3 = arith.constant 0 : index
    %c0_4 = arith.constant 0 : index
    %2 = vector.load %arg2[%c0_2, %c0_3, %c0_4] : memref<1x16x32xbf16, #tpu.memory_space<vmem>>, vector<1x16x32xbf16>
    %3 = vector.shape_cast %2 : vector<1x16x32xbf16> to vector<16x32xbf16>
    %c0_5 = arith.constant 0 : index
    %c0_6 = arith.constant 0 : index
    %4 = vector.load %arg3[%c0_5, %c0_6] : memref<16x32xbf16, #tpu.memory_space<vmem>>, vector<16x32xbf16>
    %cst = arith.constant dense<0.000000e+00> : vector<16x16xf32>
    %5 = tpu.matmul %1, %4, %cst {dimension_numbers = #tpu.dot_dimension_numbers<[1], [1], [0], [0], [0, 0, 1, 0], [], []>} : vector<16x32xbf16>, vector<16x32xbf16>, vector<16x16xf32> -> vector<16x16xf32>
    %cst_7 = arith.constant dense<0xFF800000> : vector<16xf32>
    %6 = vector.multi_reduction <maximumf>, %5, %cst_7 [1] : vector<16x16xf32> to vector<16xf32>
    %7 = vector.shape_cast %6 : vector<16xf32> to vector<16x1xf32>
    %8 = vector.broadcast %7 : vector<16x1xf32> to vector<16x16xf32>
    %9 = arith.subf %5, %8 : vector<16x16xf32>
    %10 = math.exp %9 : vector<16x16xf32>
    %cst_8 = arith.constant dense<0.000000e+00> : vector<16xf32>
    %11 = vector.multi_reduction <add>, %10, %cst_8 [1] : vector<16x16xf32> to vector<16xf32>
    %12 = vector.shape_cast %11 : vector<16xf32> to vector<16x1xf32>
    %13 = vector.broadcast %12 : vector<16x1xf32> to vector<16x16xf32>
    %14 = arith.divf %10, %13 : vector<16x16xf32>
    %c0_9 = arith.constant 0 : index
    %c0_10 = arith.constant 0 : index
    %15 = vector.load %arg5[%c0_9, %c0_10] : memref<32x32xbf16, #tpu.memory_space<vmem>>, vector<32x32xbf16>
    %cst_11 = arith.constant dense<0.000000e+00> : vector<16x32xf32>
    %16 = tpu.matmul %3, %15, %cst_11 {dimension_numbers = #tpu.dot_dimension_numbers<[1], [0], [0], [1], [0, 0, 1, 1], [], []>} : vector<16x32xbf16>, vector<32x32xbf16>, vector<16x32xf32> -> vector<16x32xf32>
    %c0_12 = arith.constant 0 : index
    %c0_13 = arith.constant 0 : index
    %17 = vector.load %arg6[%c0_12, %c0_13] : memref<1x32xf32, #tpu.memory_space<vmem>>, vector<1x32xf32>
    %18 = vector.broadcast %17 : vector<1x32xf32> to vector<16x32xf32>
    %19 = arith.addf %16, %18 : vector<16x32xf32>
    %20 = arith.negf %19 : vector<16x32xf32>
    %21 = math.exp %20 : vector<16x32xf32>
    %cst_14 = arith.constant 1.000000e+00 : f32
    %22 = vector.broadcast %cst_14 : f32 to vector<16x32xf32>
    %23 = arith.addf %22, %21 : vector<16x32xf32>
    %24 = arith.divf %22, %23 : vector<16x32xf32>
    %c0_15 = arith.constant 0 : index
    %c0_16 = arith.constant 0 : index
    %25 = vector.load %arg7[%c0_15, %c0_16] : memref<32x32xbf16, #tpu.memory_space<vmem>>, vector<32x32xbf16>
    %cst_17 = arith.constant dense<0.000000e+00> : vector<16x32xf32>
    %26 = tpu.matmul %3, %25, %cst_17 {dimension_numbers = #tpu.dot_dimension_numbers<[1], [0], [0], [1], [0, 0, 1, 1], [], []>} : vector<16x32xbf16>, vector<32x32xbf16>, vector<16x32xf32> -> vector<16x32xf32>
    %c0_18 = arith.constant 0 : index
    %c0_19 = arith.constant 0 : index
    %27 = vector.load %arg8[%c0_18, %c0_19] : memref<1x32xf32, #tpu.memory_space<vmem>>, vector<1x32xf32>
    %28 = vector.broadcast %27 : vector<1x32xf32> to vector<16x32xf32>
    %29 = arith.addf %26, %28 : vector<16x32xf32>
    %30 = math.tanh %29 : vector<16x32xf32>
    %31 = vector.shape_cast %14 : vector<16x16xf32> to vector<2x8x16xf32>
    %32 = vector.shape_cast %24 : vector<16x32xf32> to vector<2x8x32xf32>
    %33 = vector.shape_cast %30 : vector<16x32xf32> to vector<2x8x32xf32>
    %c0_20 = arith.constant 0 : index
    %c0_21 = arith.constant 0 : index
    %34 = vector.load %arg4[%c0_20, %c0_21] : memref<16x32xf32, #tpu.memory_space<vmem>>, vector<16x32xf32>
    %35 = vector.shape_cast %34 : vector<16x32xf32> to vector<1x16x32xf32>
    %36 = vector.shape_cast %35 : vector<1x16x32xf32> to vector<1x16x32xf32>
    %37 = vector.broadcast %36 : vector<1x16x32xf32> to vector<2x16x32xf32>
    %38 = vector.extract_strided_slice %31 {offsets = [0, 0, 0], sizes = [2, 4, 16], strides = [1, 1, 1]} : vector<2x8x16xf32> to vector<2x4x16xf32>
    %39 = vector.extract_strided_slice %32 {offsets = [0, 0, 0], sizes = [2, 4, 32], strides = [1, 1, 1]} : vector<2x8x32xf32> to vector<2x4x32xf32>
    %40 = vector.extract_strided_slice %33 {offsets = [0, 0, 0], sizes = [2, 4, 32], strides = [1, 1, 1]} : vector<2x8x32xf32> to vector<2x4x32xf32>
    %41 = vector.shape_cast %38 : vector<2x4x16xf32> to vector<2x4x16x1xf32>
    %42 = vector.shape_cast %39 : vector<2x4x32xf32> to vector<2x4x1x32xf32>
    %43 = vector.broadcast %41 : vector<2x4x16x1xf32> to vector<2x4x16x32xf32>
    %44 = vector.broadcast %42 : vector<2x4x1x32xf32> to vector<2x4x16x32xf32>
    %45 = arith.mulf %43, %44 : vector<2x4x16x32xf32>
    %cst_22 = arith.constant 1.000000e+00 : f32
    %46 = vector.broadcast %cst_22 : f32 to vector<2x4x16x32xf32>
    %47 = arith.subf %46, %45 : vector<2x4x16x32xf32>
    %48 = vector.shape_cast %38 : vector<2x4x16xf32> to vector<2x4x16x1xf32>
    %49 = vector.shape_cast %40 : vector<2x4x32xf32> to vector<2x4x1x32xf32>
    %50 = vector.broadcast %48 : vector<2x4x16x1xf32> to vector<2x4x16x32xf32>
    %51 = vector.broadcast %49 : vector<2x4x1x32xf32> to vector<2x4x16x32xf32>
    %52 = arith.mulf %50, %51 : vector<2x4x16x32xf32>
    %53 = vector.extract_strided_slice %38 {offsets = [0, 0, 0], sizes = [2, 1, 16], strides = [1, 1, 1]} : vector<2x4x16xf32> to vector<2x1x16xf32>
    %54 = vector.shape_cast %53 : vector<2x1x16xf32> to vector<2x16xf32>
    %55 = vector.shape_cast %54 : vector<2x16xf32> to vector<2x16x1xf32>
    %56 = vector.broadcast %55 : vector<2x16x1xf32> to vector<2x16x32xf32>
    %57 = arith.mulf %56, %37 : vector<2x16x32xf32>
    %cst_23 = arith.constant dense<0.000000e+00> : vector<2x32xf32>
    %58 = vector.multi_reduction <add>, %57, %cst_23 [1] : vector<2x16x32xf32> to vector<2x32xf32>
    %c0_24 = arith.constant 0 : index
    %c0_25 = arith.constant 0 : index
    %59 = vector.load %arg10[%c0_24, %c0_25] : memref<2x256xf32, #tpu.memory_space<vmem>>, vector<2x32xf32>
    tpu.vector_store %arg10[%c0_24, %c0_25], %58 {strides = array<i32>} : memref<2x256xf32, #tpu.memory_space<vmem>>, vector<2x32xf32>,
    %60 = vector.extract_strided_slice %47 {offsets = [0, 0, 0, 0], sizes = [2, 1, 16, 32], strides = [1, 1, 1, 1]} : vector<2x4x16x32xf32> to vector<2x1x16x32xf32>
    %61 = vector.shape_cast %60 : vector<2x1x16x32xf32> to vector<2x16x32xf32>
    %62 = arith.mulf %37, %61 : vector<2x16x32xf32>
    %63 = vector.extract_strided_slice %52 {offsets = [0, 0, 0, 0], sizes = [2, 1, 16, 32], strides = [1, 1, 1, 1]} : vector<2x4x16x32xf32> to vector<2x1x16x32xf32>
    %64 = vector.shape_cast %63 : vector<2x1x16x32xf32> to vector<2x16x32xf32>
    %65 = arith.addf %62, %64 : vector<2x16x32xf32>
    %66 = vector.extract_strided_slice %38 {offsets = [0, 1, 0], sizes = [2, 1, 16], strides = [1, 1, 1]} : vector<2x4x16xf32> to vector<2x1x16xf32>
    %67 = vector.shape_cast %66 : vector<2x1x16xf32> to vector<2x16xf32>
    %68 = vector.shape_cast %67 : vector<2x16xf32> to vector<2x16x1xf32>
    %69 = vector.broadcast %68 : vector<2x16x1xf32> to vector<2x16x32xf32>
    %70 = arith.mulf %69, %65 : vector<2x16x32xf32>
    %cst_26 = arith.constant dense<0.000000e+00> : vector<2x32xf32>
    %71 = vector.multi_reduction <add>, %70, %cst_26 [1] : vector<2x16x32xf32> to vector<2x32xf32>
    %c0_27 = arith.constant 0 : index
    %c32 = arith.constant 32 : index
    %72 = vector.load %arg10[%c0_27, %c32] : memref<2x256xf32, #tpu.memory_space<vmem>>, vector<2x32xf32>
    tpu.vector_store %arg10[%c0_27, %c32], %71 {strides = array<i32>} : memref<2x256xf32, #tpu.memory_space<vmem>>, vector<2x32xf32>,
    %73 = vector.extract_strided_slice %47 {offsets = [0, 1, 0, 0], sizes = [2, 1, 16, 32], strides = [1, 1, 1, 1]} : vector<2x4x16x32xf32> to vector<2x1x16x32xf32>
    %74 = vector.shape_cast %73 : vector<2x1x16x32xf32> to vector<2x16x32xf32>
    %75 = arith.mulf %65, %74 : vector<2x16x32xf32>
    %76 = vector.extract_strided_slice %52 {offsets = [0, 1, 0, 0], sizes = [2, 1, 16, 32], strides = [1, 1, 1, 1]} : vector<2x4x16x32xf32> to vector<2x1x16x32xf32>
    %77 = vector.shape_cast %76 : vector<2x1x16x32xf32> to vector<2x16x32xf32>
    %78 = arith.addf %75, %77 : vector<2x16x32xf32>
    %79 = vector.extract_strided_slice %38 {offsets = [0, 2, 0], sizes = [2, 1, 16], strides = [1, 1, 1]} : vector<2x4x16xf32> to vector<2x1x16xf32>
    %80 = vector.shape_cast %79 : vector<2x1x16xf32> to vector<2x16xf32>
    %81 = vector.shape_cast %80 : vector<2x16xf32> to vector<2x16x1xf32>
    %82 = vector.broadcast %81 : vector<2x16x1xf32> to vector<2x16x32xf32>
    %83 = arith.mulf %82, %78 : vector<2x16x32xf32>
    %cst_28 = arith.constant dense<0.000000e+00> : vector<2x32xf32>
    %84 = vector.multi_reduction <add>, %83, %cst_28 [1] : vector<2x16x32xf32> to vector<2x32xf32>
    %c0_29 = arith.constant 0 : index
    %c64 = arith.constant 64 : index
    %85 = vector.load %arg10[%c0_29, %c64] : memref<2x256xf32, #tpu.memory_space<vmem>>, vector<2x32xf32>
    tpu.vector_store %arg10[%c0_29, %c64], %84 {strides = array<i32>} : memref<2x256xf32, #tpu.memory_space<vmem>>, vector<2x32xf32>,
    %86 = vector.extract_strided_slice %47 {offsets = [0, 2, 0, 0], sizes = [2, 1, 16, 32], strides = [1, 1, 1, 1]} : vector<2x4x16x32xf32> to vector<2x1x16x32xf32>
    %87 = vector.shape_cast %86 : vector<2x1x16x32xf32> to vector<2x16x32xf32>
    %88 = arith.mulf %78, %87 : vector<2x16x32xf32>
    %89 = vector.extract_strided_slice %52 {offsets = [0, 2, 0, 0], sizes = [2, 1, 16, 32], strides = [1, 1, 1, 1]} : vector<2x4x16x32xf32> to vector<2x1x16x32xf32>
    %90 = vector.shape_cast %89 : vector<2x1x16x32xf32> to vector<2x16x32xf32>
    %91 = arith.addf %88, %90 : vector<2x16x32xf32>
    %92 = vector.extract_strided_slice %38 {offsets = [0, 3, 0], sizes = [2, 1, 16], strides = [1, 1, 1]} : vector<2x4x16xf32> to vector<2x1x16xf32>
    %93 = vector.shape_cast %92 : vector<2x1x16xf32> to vector<2x16xf32>
    %94 = vector.shape_cast %93 : vector<2x16xf32> to vector<2x16x1xf32>
    %95 = vector.broadcast %94 : vector<2x16x1xf32> to vector<2x16x32xf32>
    %96 = arith.mulf %95, %91 : vector<2x16x32xf32>
    %cst_30 = arith.constant dense<0.000000e+00> : vector<2x32xf32>
    %97 = vector.multi_reduction <add>, %96, %cst_30 [1] : vector<2x16x32xf32> to vector<2x32xf32>
    %c0_31 = arith.constant 0 : index
    %c96 = arith.constant 96 : index
    %98 = vector.load %arg10[%c0_31, %c96] : memref<2x256xf32, #tpu.memory_space<vmem>>, vector<2x32xf32>
    tpu.vector_store %arg10[%c0_31, %c96], %97 {strides = array<i32>} : memref<2x256xf32, #tpu.memory_space<vmem>>, vector<2x32xf32>,
    %99 = vector.extract_strided_slice %47 {offsets = [0, 3, 0, 0], sizes = [2, 1, 16, 32], strides = [1, 1, 1, 1]} : vector<2x4x16x32xf32> to vector<2x1x16x32xf32>
    %100 = vector.shape_cast %99 : vector<2x1x16x32xf32> to vector<2x16x32xf32>
    %101 = arith.mulf %91, %100 : vector<2x16x32xf32>
    %102 = vector.extract_strided_slice %52 {offsets = [0, 3, 0, 0], sizes = [2, 1, 16, 32], strides = [1, 1, 1, 1]} : vector<2x4x16x32xf32> to vector<2x1x16x32xf32>
    %103 = vector.shape_cast %102 : vector<2x1x16x32xf32> to vector<2x16x32xf32>
    %104 = arith.addf %101, %103 : vector<2x16x32xf32>
    %105 = vector.extract_strided_slice %31 {offsets = [0, 4, 0], sizes = [2, 4, 16], strides = [1, 1, 1]} : vector<2x8x16xf32> to vector<2x4x16xf32>
    %106 = vector.extract_strided_slice %32 {offsets = [0, 4, 0], sizes = [2, 4, 32], strides = [1, 1, 1]} : vector<2x8x32xf32> to vector<2x4x32xf32>
    %107 = vector.extract_strided_slice %33 {offsets = [0, 4, 0], sizes = [2, 4, 32], strides = [1, 1, 1]} : vector<2x8x32xf32> to vector<2x4x32xf32>
    %108 = vector.shape_cast %105 : vector<2x4x16xf32> to vector<2x4x16x1xf32>
    %109 = vector.shape_cast %106 : vector<2x4x32xf32> to vector<2x4x1x32xf32>
    %110 = vector.broadcast %108 : vector<2x4x16x1xf32> to vector<2x4x16x32xf32>
    %111 = vector.broadcast %109 : vector<2x4x1x32xf32> to vector<2x4x16x32xf32>
    %112 = arith.mulf %110, %111 : vector<2x4x16x32xf32>
    %cst_32 = arith.constant 1.000000e+00 : f32
    %113 = vector.broadcast %cst_32 : f32 to vector<2x4x16x32xf32>
    %114 = arith.subf %113, %112 : vector<2x4x16x32xf32>
    %115 = vector.shape_cast %105 : vector<2x4x16xf32> to vector<2x4x16x1xf32>
    %116 = vector.shape_cast %107 : vector<2x4x32xf32> to vector<2x4x1x32xf32>
    %117 = vector.broadcast %115 : vector<2x4x16x1xf32> to vector<2x4x16x32xf32>
    %118 = vector.broadcast %116 : vector<2x4x1x32xf32> to vector<2x4x16x32xf32>
    %119 = arith.mulf %117, %118 : vector<2x4x16x32xf32>
    %120 = vector.extract_strided_slice %105 {offsets = [0, 0, 0], sizes = [2, 1, 16], strides = [1, 1, 1]} : vector<2x4x16xf32> to vector<2x1x16xf32>
    %121 = vector.shape_cast %120 : vector<2x1x16xf32> to vector<2x16xf32>
    %122 = vector.shape_cast %121 : vector<2x16xf32> to vector<2x16x1xf32>
    %123 = vector.broadcast %122 : vector<2x16x1xf32> to vector<2x16x32xf32>
    %124 = arith.mulf %123, %104 : vector<2x16x32xf32>
    %cst_33 = arith.constant dense<0.000000e+00> : vector<2x32xf32>
    %125 = vector.multi_reduction <add>, %124, %cst_33 [1] : vector<2x16x32xf32> to vector<2x32xf32>
    %c0_34 = arith.constant 0 : index
    %c128 = arith.constant 128 : index
    %126 = vector.load %arg10[%c0_34, %c128] : memref<2x256xf32, #tpu.memory_space<vmem>>, vector<2x32xf32>
    tpu.vector_store %arg10[%c0_34, %c128], %125 {strides = array<i32>} : memref<2x256xf32, #tpu.memory_space<vmem>>, vector<2x32xf32>,
    %127 = vector.extract_strided_slice %114 {offsets = [0, 0, 0, 0], sizes = [2, 1, 16, 32], strides = [1, 1, 1, 1]} : vector<2x4x16x32xf32> to vector<2x1x16x32xf32>
    %128 = vector.shape_cast %127 : vector<2x1x16x32xf32> to vector<2x16x32xf32>
    %129 = arith.mulf %104, %128 : vector<2x16x32xf32>
    %130 = vector.extract_strided_slice %119 {offsets = [0, 0, 0, 0], sizes = [2, 1, 16, 32], strides = [1, 1, 1, 1]} : vector<2x4x16x32xf32> to vector<2x1x16x32xf32>
    %131 = vector.shape_cast %130 : vector<2x1x16x32xf32> to vector<2x16x32xf32>
    %132 = arith.addf %129, %131 : vector<2x16x32xf32>
    %133 = vector.extract_strided_slice %105 {offsets = [0, 1, 0], sizes = [2, 1, 16], strides = [1, 1, 1]} : vector<2x4x16xf32> to vector<2x1x16xf32>
    %134 = vector.shape_cast %133 : vector<2x1x16xf32> to vector<2x16xf32>
    %135 = vector.shape_cast %134 : vector<2x16xf32> to vector<2x16x1xf32>
    %136 = vector.broadcast %135 : vector<2x16x1xf32> to vector<2x16x32xf32>
    %137 = arith.mulf %136, %132 : vector<2x16x32xf32>
    %cst_35 = arith.constant dense<0.000000e+00> : vector<2x32xf32>
    %138 = vector.multi_reduction <add>, %137, %cst_35 [1] : vector<2x16x32xf32> to vector<2x32xf32>
    %c0_36 = arith.constant 0 : index
    %c160 = arith.constant 160 : index
    %139 = vector.load %arg10[%c0_36, %c160] : memref<2x256xf32, #tpu.memory_space<vmem>>, vector<2x32xf32>
    tpu.vector_store %arg10[%c0_36, %c160], %138 {strides = array<i32>} : memref<2x256xf32, #tpu.memory_space<vmem>>, vector<2x32xf32>,
    %140 = vector.extract_strided_slice %114 {offsets = [0, 1, 0, 0], sizes = [2, 1, 16, 32], strides = [1, 1, 1, 1]} : vector<2x4x16x32xf32> to vector<2x1x16x32xf32>
    %141 = vector.shape_cast %140 : vector<2x1x16x32xf32> to vector<2x16x32xf32>
    %142 = arith.mulf %132, %141 : vector<2x16x32xf32>
    %143 = vector.extract_strided_slice %119 {offsets = [0, 1, 0, 0], sizes = [2, 1, 16, 32], strides = [1, 1, 1, 1]} : vector<2x4x16x32xf32> to vector<2x1x16x32xf32>
    %144 = vector.shape_cast %143 : vector<2x1x16x32xf32> to vector<2x16x32xf32>
    %145 = arith.addf %142, %144 : vector<2x16x32xf32>
    %146 = vector.extract_strided_slice %105 {offsets = [0, 2, 0], sizes = [2, 1, 16], strides = [1, 1, 1]} : vector<2x4x16xf32> to vector<2x1x16xf32>
    %147 = vector.shape_cast %146 : vector<2x1x16xf32> to vector<2x16xf32>
    %148 = vector.shape_cast %147 : vector<2x16xf32> to vector<2x16x1xf32>
    %149 = vector.broadcast %148 : vector<2x16x1xf32> to vector<2x16x32xf32>
    %150 = arith.mulf %149, %145 : vector<2x16x32xf32>
    %cst_37 = arith.constant dense<0.000000e+00> : vector<2x32xf32>
    %151 = vector.multi_reduction <add>, %150, %cst_37 [1] : vector<2x16x32xf32> to vector<2x32xf32>
    %c0_38 = arith.constant 0 : index
    %c192 = arith.constant 192 : index
    %152 = vector.load %arg10[%c0_38, %c192] : memref<2x256xf32, #tpu.memory_space<vmem>>, vector<2x32xf32>
    tpu.vector_store %arg10[%c0_38, %c192], %151 {strides = array<i32>} : memref<2x256xf32, #tpu.memory_space<vmem>>, vector<2x32xf32>,
    %153 = vector.extract_strided_slice %114 {offsets = [0, 2, 0, 0], sizes = [2, 1, 16, 32], strides = [1, 1, 1, 1]} : vector<2x4x16x32xf32> to vector<2x1x16x32xf32>
    %154 = vector.shape_cast %153 : vector<2x1x16x32xf32> to vector<2x16x32xf32>
    %155 = arith.mulf %145, %154 : vector<2x16x32xf32>
    %156 = vector.extract_strided_slice %119 {offsets = [0, 2, 0, 0], sizes = [2, 1, 16, 32], strides = [1, 1, 1, 1]} : vector<2x4x16x32xf32> to vector<2x1x16x32xf32>
    %157 = vector.shape_cast %156 : vector<2x1x16x32xf32> to vector<2x16x32xf32>
    %158 = arith.addf %155, %157 : vector<2x16x32xf32>
    %159 = vector.extract_strided_slice %105 {offsets = [0, 3, 0], sizes = [2, 1, 16], strides = [1, 1, 1]} : vector<2x4x16xf32> to vector<2x1x16xf32>
    %160 = vector.shape_cast %159 : vector<2x1x16xf32> to vector<2x16xf32>
    %161 = vector.shape_cast %160 : vector<2x16xf32> to vector<2x16x1xf32>
    %162 = vector.broadcast %161 : vector<2x16x1xf32> to vector<2x16x32xf32>
    %163 = arith.mulf %162, %158 : vector<2x16x32xf32>
    %cst_39 = arith.constant dense<0.000000e+00> : vector<2x32xf32>
    %164 = vector.multi_reduction <add>, %163, %cst_39 [1] : vector<2x16x32xf32> to vector<2x32xf32>
    %c0_40 = arith.constant 0 : index
    %c224 = arith.constant 224 : index
    %165 = vector.load %arg10[%c0_40, %c224] : memref<2x256xf32, #tpu.memory_space<vmem>>, vector<2x32xf32>
    tpu.vector_store %arg10[%c0_40, %c224], %164 {strides = array<i32>} : memref<2x256xf32, #tpu.memory_space<vmem>>, vector<2x32xf32>,
    %c0_41 = arith.constant 0 : index
    %c0_42 = arith.constant 0 : index
    %166 = vector.load %arg10[%c0_41, %c0_42] : memref<2x256xf32, #tpu.memory_space<vmem>>, vector<2x256xf32>
    %c0_43 = arith.constant 0 : index
    %c0_44 = arith.constant 0 : index
    %c0_45 = arith.constant 0 : index
    %167 = vector.load %arg9[%c0_43, %c0_44, %c0_45] : memref<1x2x256xf32, #tpu.memory_space<vmem>>, vector<1x2x256xf32>
    %168 = vector.shape_cast %167 : vector<1x2x256xf32> to vector<2x256xf32>
    %169 = vector.shape_cast %166 : vector<2x256xf32> to vector<1x2x256xf32>
    tpu.vector_store %arg9[%c0_43, %c0_44, %c0_45], %169 {strides = array<i32>} : memref<1x2x256xf32, #tpu.memory_space<vmem>>, vector<1x2x256xf32>,
    return
  }
  func.func @transform_0(%arg0: i32) -> (i32, i32, i32) {
    %c0_i32 = arith.constant 0 : i32
    %c0_i32_0 = arith.constant 0 : i32
    %c0_i32_1 = arith.constant 0 : i32
    return %arg0, %c0_i32, %c0_i32_0 : i32, i32, i32
  }
  func.func @transform_1(%arg0: i32) -> (i32, i32, i32) {
    %c0_i32 = arith.constant 0 : i32
    %c0_i32_0 = arith.constant 0 : i32
    %c0_i32_1 = arith.constant 0 : i32
    return %arg0, %c0_i32, %c0_i32_0 : i32, i32, i32
  }
  func.func @transform_2(%arg0: i32) -> (i32, i32) {
    %c0_i32 = arith.constant 0 : i32
    %c0_i32_0 = arith.constant 0 : i32
    %c0_i32_1 = arith.constant 0 : i32
    return %c0_i32, %c0_i32_0 : i32, i32
  }
  func.func @transform_3(%arg0: i32) -> (i32, i32) {
    %c0_i32 = arith.constant 0 : i32
    %c0_i32_0 = arith.constant 0 : i32
    %c0_i32_1 = arith.constant 0 : i32
    return %c0_i32, %c0_i32_0 : i32, i32
  }
  func.func @transform_4(%arg0: i32) -> (i32, i32) {
    %c0_i32 = arith.constant 0 : i32
    %c0_i32_0 = arith.constant 0 : i32
    %c0_i32_1 = arith.constant 0 : i32
    return %c0_i32, %c0_i32_0 : i32, i32
  }
  func.func @transform_5(%arg0: i32) -> (i32, i32) {
    %c0_i32 = arith.constant 0 : i32
    %c0_i32_0 = arith.constant 0 : i32
    %c0_i32_1 = arith.constant 0 : i32
    return %c0_i32, %c0_i32_0 : i32, i32
  }
  func.func @transform_6(%arg0: i32) -> (i32, i32) {
    %c0_i32 = arith.constant 0 : i32
    %c0_i32_0 = arith.constant 0 : i32
    %c0_i32_1 = arith.constant 0 : i32
    return %c0_i32, %c0_i32_0 : i32, i32
  }
  func.func @transform_7(%arg0: i32) -> (i32, i32) {
    %c0_i32 = arith.constant 0 : i32
    %c0_i32_0 = arith.constant 0 : i32
    %c0_i32_1 = arith.constant 0 : i32
    return %c0_i32, %c0_i32_0 : i32, i32
  }
  func.func @transform_8(%arg0: i32) -> (i32, i32, i32) {
    %c0_i32 = arith.constant 0 : i32
    %c0_i32_0 = arith.constant 0 : i32
    %c0_i32_1 = arith.constant 0 : i32
    return %arg0, %c0_i32, %c0_i32_0 : i32, i32, i32
  }
}

</mosaic_0001>

<bundles_post_ra>
// kernel: tpu_custom_call.1
= control target key start
LH: loop header
LB: loop body
LE: loop exit
PB: predicated region body
PF: predicated region fallthrough
CT: control target
= control target key end

     0   :  { %s2628_s0 = inlined_call_operand.hbm [shape: bf16[2,16,32], index: 0, kind: input, shape index: {}]   ;;  %s2629_s1 = inlined_call_operand.hbm [shape: bf16[2,16,32], index: 1, kind: input, shape index: {}]   ;;  %s2630_s2 = inlined_call_operand.hbm [shape: bf16[16,32], index: 2, kind: input, shape index: {}]   ;;  %s2631_s3 = inlined_call_operand.hbm [shape: f32[16,32], index: 3, kind: input, shape index: {}]   ;;  %s2632_s4 = inlined_call_operand.hbm [shape: bf16[32,32], index: 4, kind: input, shape index: {}]   ;;  %s2633_s5 = inlined_call_operand.vmem [shape: f32[1,32], index: 5, kind: input, shape index: {}]   ;;  %s2634_s6 = inlined_call_operand.hbm [shape: bf16[32,32], index: 6, kind: input, shape index: {}]   ;;  %s2635_s7 = inlined_call_operand.vmem [shape: f32[1,32], index: 7, kind: input, shape index: {}]   ;;  %s2636_s8 = inlined_call_operand.hbm [shape: f32[2,2,256], index: 8, kind: output, shape index: {}]  }
   0x1   :  { %2642 = sst [smem:[#allocation23_spill]] %s2628_s0 }
   0x2   :  { %2643 = sst [smem:[#allocation24_spill]] %s2630_s2 }
   0x3   :  { %2644 = sst [smem:[#allocation25_spill]] %s2631_s3 }
   0x4   :  { %2645 = sst [smem:[#allocation26_spill]] %s2632_s4 }
   0x5   :  { %2646 = sst [smem:[#allocation27_spill]] %s2634_s6 }
   0x6   :  { %13 = vsyncpa [#allocation4], 0 }
   0x7   :  { %15 = vsyncpa [#allocation4 + $0x1], 0 }
   0x8   :  { %16 = vsyncpa [#allocation7], 0 }
   0x9   :  { %18 = vsyncpa [#allocation7 + $0x1], 0 }
   0xa   :  { %19 = vsyncpa [#allocation10], 0 }
   0xb   :  { %20 = vsyncpa [#allocation13], 0 }
   0xc   :  { %21 = vsyncpa [#allocation5], 0 }
   0xd   :  { %23 = vsyncpa [#allocation5 + $0x1], 0  ;;  %s2053_s27 = smov 0   ;;  %s2055_s28 = smov 0  }
   0xe   :  { %s2057_s29 = smov 0   ;;  %s2059_s30 = smov 0  }
   0xf LB: > { %2647 = sst [smem:[#allocation21_spill]] %s1991_s29  ;;  %s2074_s9 = sadd.s32 4294967295, %s1995_s30   ;;  %s1995_s30 = sphi %s2059_s30, %s2667_s30   ;;  %s1991_s29 = sphi %s2057_s29, %s2664_s29   ;;  %s1987_s28 = sphi %s2055_s28, %s2666_s28   ;;  %s1983_s27 = sphi %s2053_s27, %s2665_s27  }
  0x10   : > { %s1517_s10 = sadd.s32 4294967294, %s1995_s30   ;;  %p49_p0 = scmp.ne.s32.totalorder %s1987_s28, %s1983_s27 }
  0x11   : > { %p50_p1 = scmp.eq.s32.totalorder %s2074_s9, 0  ;;  %p225_p2 = scmp.eq.s32.totalorder %s2074_s9, 1 }
  0x12   : > { %p231_p3 = scmp.eq.s32.totalorder %s1517_s10, 1  ;;  %p1518_p5 = scmp.ge.s32.totalorder %s1995_s30, 1 }
  0x13   : > { %p2083_p4 = por %p50_p1, %p49_p0  ;;  %p238_p7 = scmp.lt.s32.totalorder %s1995_s30, 3 }
  0x14   : > { %p2088_p6 = por %p231_p3, %p49_p0  ;;  %s2650_s2 = sld [smem:[#allocation24_spill]] }
  0x15   : > { %p2096_p8 = pnand %p1518_p5, %p238_p7  ;;  %s1997_s17 = smov [#allocation8]  }
  0x16   : > { %s251_s18 = sshll.u32 %s1997_s17, 4  ;;  %s2653_s3 = sld [smem:[#allocation25_spill]]  ;;  %s252_s18 = int_to_ptr.vmem [resolvable:$true] %s251_s18 }
  0x17   : > { %p1608_p9 = pneg %p2096_p8  ;;  %s2637_s23 = smov 64  }
  0x18   : > { %s2639_s24 = smov 4   ;;  %s2000_s25 = smov [#allocation9]  }
  0x19   : > { %p2104_p10 = pnand %p1608_p9, %p50_p1  ;;  %s265_s26 = sshll.u32 %s2000_s25, 4  ;;  %s266_s26 = int_to_ptr.vmem [resolvable:$true] %s265_s26 }
  0x1a   : > { %s249_s15 = sshll.u32 %s2650_s2, 4  ;;  %s2001_s10 = smov 128   ;;  %s250_s15 = int_to_ptr.hbm [resolvable:$true] %s249_s15 }
  0x1b   : > { %1611 = dma.hbm_to_vmem [thread:$0]  (!%p2104_p10), %s250_s15, 128, %s252_s18, [#allocation7], %s2637_s23, %s2637_s23, %s2639_s24  }
  0x1c   : > { %s263_s22 = sshll.u32 %s2653_s3, 4  ;;  %s2002_s13 = smov 8   ;;  %s264_s22 = int_to_ptr.hbm [resolvable:$true] %s263_s22 }
  0x1d   : > { %1614 = dma.hbm_to_vmem [thread:$0]  (!%p2104_p10), %s264_s22, 256, %s266_s26, [#allocation10], %s2001_s10, %s2001_s10, %s2002_s13  }
  0x1e   : > { %s2654_s4 = sld [smem:[#allocation26_spill]]  ;;  %s2003_s15 = smov [#allocation11]  }
  0x1f   : > { %s279_s18 = sshll.u32 %s2003_s15, 4  ;;  %s2655_s6 = sld [smem:[#allocation27_spill]]  ;;  %s280_s18 = int_to_ptr.vmem [resolvable:$true] %s279_s18 }
  0x20   : > { %s2656_s22 = smov 64   ;;  %s2004_s26 = smov [#allocation12]  }
  0x21   : > { %s296_s10 = sshll.u32 %s2004_s26, 4  ;;  %s2136_s13 = sadd.s32 1, %s1995_s30   ;;  %s297_s10 = int_to_ptr.vmem [resolvable:$true] %s296_s10 }
  0x22   : > { %s36_s14 = sadd.s32 1, %s1991_s29  ;;  %s33_s17 = ssub.s32 %s1995_s30, %s2136_s13 }
  0x23   : > { %p43_p12 = scmp.ne.s32.totalorder %s1991_s29, %s1987_s28  ;;  %p34_p13 = scmp.eq.s32.totalorder %s33_s17, 0 }
  0x24   : > { %s277_s20 = sshll.u32 %s2654_s4, 4  ;;  %p44_p0 = scmp.eq.s32.totalorder %s1995_s30, 0  ;;  %s278_s20 = int_to_ptr.hbm [resolvable:$true] %s277_s20 }
  0x25   : > { %s294_s23 = sshll.u32 %s2655_s6, 4  ;;  %p2146_p3 = por %p225_p2, %p43_p12  ;;  %s295_s23 = int_to_ptr.hbm [resolvable:$true] %s294_s23 }
  0x26   : > { %1617 = dma.hbm_to_vmem [thread:$0]  (!%p2104_p10), %s278_s20, 256, %s280_s18, [#allocation10], %s2656_s22, %s2656_s22, %s2639_s24  }
  0x27   : > { %1620 = dma.hbm_to_vmem [thread:$0]  (!%p2104_p10), %s295_s23, 256, %s297_s10, [#allocation13], %s2656_s22, %s2656_s22, %s2639_s24  }
  0x28   : > { %p1636_p5 = scmp.lt.s32.totalorder %s1995_s30, 2  ;;  %p45_p7 = por %p44_p0, %p43_p12 }
  0x29   : > { %s2152_s15 = scalar_select %p34_p13, %s1991_s29, %s36_s14  }
  0x2a   : > { %s313_s19 = sand.u32 1, %s1991_s29   ;;  %s1576_s23 = sshll.u32 %s1995_s30, 3 }
  0x2b   : > { %2658 = sst [smem:[#allocation22_spill]] %s2152_s15  ;;  %s2155_s18 = sshll.u32 %s313_s19, 3 }
  0x2c   : > { %s2659_s0 = sld [smem:[#allocation23_spill]]  ;;  %s317_s10 = scalar_lea.vmem [#allocation3], %s2155_s18 }
  0x2d   : > { %s325_s17 = sshll.u32 %s317_s10, 4  ;;  %p2162_p2 = pnand %p1636_p5, %p45_p7  ;;  %s326_s17 = int_to_ptr.vmem [resolvable:$true] %s325_s17 }
  0x2e   : > { %s344_s4 = scalar_lea.hbm %s2629_s1, %s1576_s23  ;;  %s314_s15 = scalar_lea.sflag [#allocation4], %s313_s19 }
  0x2f   : > { %s345_s6 = sshll.u32 %s344_s4, 4  ;;  %p1857_p10 = pneg %p2162_p2  ;;  %s346_s6 = int_to_ptr.hbm [resolvable:$true] %s345_s6 }
  0x32   : > { %s322_s26 = scalar_lea.hbm %s2659_s0, %s1576_s23  ;;  %s1860_s10 = scalar_lea.hbm %s2659_s0, 16 }
  0x33   : > { %s323_s24 = sshll.u32 %s322_s26, 4  ;;  %s324_s24 = int_to_ptr.hbm [resolvable:$true] %s323_s24 }
  0x34   : > { %s1853_s29 = sshra.s32 %s324_s24, 4  ;;  %s1854_s29 = int_to_ptr.hbm [resolvable:$true] %s1853_s29 }
  0x35   : > { %s1855_s21 = scalar_lea.hbm %s1854_s29, 8  ;;  %p1861_p0 = scmp.lt.s32.totalorder %s1854_s29, %s2659_s0 }
  0x36   : > { %p1856_p9 = scmp.ne.s32.totalorder %s1854_s29, %s1855_s21  ;;  %p1862_p5 = scmp.lt.s32.totalorder %s1860_s10, %s1855_s21 }
  0x38   : > { %p1858_p12 = pnand %p1857_p10, %p1856_p9  ;;  %p1863_p7 = por %p1862_p5, %p1861_p0 }
  0x3a   : > { %p1859_p13 = pneg %p1858_p12 }
  0x3c   : > { %p1864_p11 = pnand %p1863_p7, %p1859_p13 }
  0x3e   : > { %1867 = shalt.err (!%p1864_p11)
}
  0x3f   : > { %s2661_s4 = smov 4   ;;  %s339_s19 = scalar_lea.vmem [#allocation6], %s2155_s18 }
  0x40   : > { %1624 = dma.hbm_to_vmem [thread:$0]  (!%p2162_p2), %s324_s24, 128, %s326_s17, %s314_s15, %s2656_s22, %s2656_s22, %s2661_s4  }
  0x41   : > { %s347_s23 = sshll.u32 %s339_s19, 4  ;;  %s335_s25 = sand.u32 1, %s1995_s30   ;;  %s348_s23 = int_to_ptr.vmem [resolvable:$true] %s347_s23 }
  0x42   : > { %s336_s26 = scalar_lea.sflag [#allocation7], %s335_s25  ;;  %s1883_s29 = sshra.s32 %s346_s6, 4  ;;  %s1884_s29 = int_to_ptr.hbm [resolvable:$true] %s1883_s29 }
  0x43   : > { %s1885_s21 = scalar_lea.hbm %s1884_s29, 8  ;;  %s1890_s14 = scalar_lea.hbm %s2629_s1, 16 }
  0x44   : > { %p1886_p9 = scmp.ne.s32.totalorder %s1884_s29, %s1885_s21  ;;  %p1891_p13 = scmp.lt.s32.totalorder %s1884_s29, %s2629_s1 }
  0x45   : > { %p1892_p0 = scmp.lt.s32.totalorder %s1890_s14, %s1885_s21 }
  0x46   : > { %p1888_p11 = pnand %p1886_p9, %p1857_p10 }
  0x47   : > { %p1893_p5 = por %p1892_p0, %p1891_p13 }
  0x48   : > { %p1889_p12 = pneg %p1888_p11 }
  0x4a   : > { %p1894_p7 = pnand %p1893_p5, %p1889_p12 }
  0x4c   : > { %1897 = shalt.err (!%p1894_p7)
}
  0x4d   : > { %1627 = dma.hbm_to_vmem [thread:$0]  (!%p2162_p2), %s346_s6, 128, %s348_s23, %s336_s26, %s2656_s22, %s2656_s22, %s2661_s4  }
  0x4e   : > { %359 = sbr.rel (%p2096_p8) target bundleno = 936 (0x3a8), region = 52  ;;  %s2204_s15 = sand.u32 (!%p2096_p8), 1, %s1987_s28  }
  0x4f   : > { %s1531_s0 = sshll.u32 (!%p2096_p8), %s2204_s15, 3  ;;  %s362_s18 = scalar_lea.sflag (!%p2096_p8), [#allocation4], %s2204_s15 }
  0x50   : > { %s365_s17 = scalar_lea.vmem (!%p2096_p8), [#allocation3], %s1531_s0 }
  0x53   : > { %1958 = dma.done.wait (%p2083_p4), %s362_s18, 128  }
  0x54   : > { %1960 = vsyncadd (%p2083_p4), %s362_s18, 4294967168  ;;  %s371_s2 = sand.u32 1, %s2074_s9   ;;  %s375_s16 = scalar_lea.vmem [#allocation6], %s1531_s0 }
  0x55   : > { %s372_s6 = scalar_lea.sflag [#allocation7], %s371_s2 }
  0x56   : > { %1962 = dma.done.wait (%p2083_p4), %s372_s6, 128  }
  0x57   : > { %1964 = vsyncadd (%p2083_p4), %s372_s6, 4294967168 }
  0x58   : > { %1966 = dma.done.wait (%p50_p1), [#allocation7], 128  }
  0x59   : > { %1968 = vsyncadd (%p50_p1), [#allocation7], 4294967168 }
  0x5a   : > { %1970 = dma.done.wait (%p50_p1), [#allocation10], 512  }
  0x5b   : > { %1972 = vsyncadd (%p50_p1), [#allocation10], 4294966784 }
  0x5c   : > { %1974 = dma.done.wait (%p50_p1), [#allocation13], 256  }
  0x5d   : > { %1976 = vsyncadd (%p50_p1), [#allocation13], 4294967040  ;;  %vm451_vm0 = vcmask 261120   ;;  %v1580_v0 = vld [vmem:[#allocation8] sm:$0xff]  ;;  %vm472_vm1 = vcmask 130048   ;;  %v1584_v8 = vld [vmem:[#allocation12 + $0x8] sm:$0xff]  ;;  %v640_v22 = vlaneseq }
  0x5e   : > { %v456_v1 = vsel %vm451_vm0, %v1580_v0, 0  ;;  %v1578_v2 = vld [vmem:[%s365_s17] sm:$0xff]  ;;  %v1581_v9 = vld [vmem:[#allocation11] sm:$0xff]  ;;  %627 = vmatpush.bf16.msra.mxu2 %v1584_v8  ;;  %v1711_v53 = vld [vmem:[%s2633_s5] ss:$0 sm:$0xff]  ;;  %s2005_s23 = smov 32  }
  0x5f   : > { %465 = vmatpush.bf16.xpose.msra.mxu0 %v456_v1  ;;  %v1582_v7 = vld [vmem:[#allocation11 + $0x8] sm:$0xff]  ;;  %v1583_v11 = vld [vmem:[#allocation12] sm:$0xff]  ;;  %v1579_v12 = vld [vmem:[%s375_s16] sm:$0xff]  ;;  %v2237_v23 = vshrl.u32 %v640_v22, 7  ;;  %s2006_s25 = smov 64   ;;  %s2007_s26 = smov 96  }
  0x60   : > { %555 = vmatpush.bf16.msra.mxu1 %v1582_v7  ;;  %v1712_v22 = vld [vmem:[%s2635_s7] ss:$0 sm:$0xff]  ;;  %s1537_s29 = sshll.u32 %s2204_s15, 2  ;;  %s1585_s21 = sshll.u32 %s2074_s9, 2 }
  0x61   : > { %1687 = vset.pattern.permute.xlu0 %v2237_v23  ;;  %1685 = vset.pattern.permute.xlu2 %v2237_v23  ;;  %v2242_v24 = vadd.s32 8, %v2237_v23  ;;  %s1381_s14 = scalar_lea.hbm %s2636_s8, %s1585_s21  ;;  %s433_s24 = scalar_lea.vmem [#allocation14], %s1537_s29 }
  0x62   : > { %628 = vmatpush.bf16.msra.mxu2 %v1583_v11  ;;  %s1383_s0 = sshll.u32 %s433_s24, 4  ;;  %s1385_s18 = sshll.u32 %s1381_s14, 4  ;;  %s1384_s0 = int_to_ptr.vmem [resolvable:$true] %s1383_s0  ;;  %s1386_s18 = int_to_ptr.hbm [resolvable:$true] %s1385_s18 }
  0x63   : > { %1688 = vset.pattern.permute.xlu1 %v2242_v24  ;;  %s1370_s17 = scalar_lea.sflag [#allocation5], %s2204_s15  ;;  %s1927_s2 = sshra.s32 %s1386_s18, 4  ;;  %s1928_s2 = int_to_ptr.hbm [resolvable:$true] %s1927_s2 }
  0x64   : > { %556 = vmatpush.bf16.msra.mxu1 %v1581_v9  ;;  %s1929_s9 = scalar_lea.hbm %s1928_s2, 4  ;;  %s1933_s11 = scalar_lea.hbm %s2636_s8, 8 }
  0x65   : > { %1570 = vmatmul.msk.bf16.vlgmr.msra.gmra.mxu2 %vm451_vm0, %v1579_v12  ;;  %p1930_p1 = scmp.ne.s32.totalorder %s1928_s2, %s1929_s9  ;;  %p1934_p2 = scmp.lt.s32.totalorder %s1928_s2, %s2636_s8 }
  0x66   : > { %1546 = vmatmul.msk.bf16.vlgmr.msra.gmra.mxu0 %vm451_vm0, %v1578_v2  ;;  %p1935_p10 = scmp.lt.s32.totalorder %s1933_s11, %s1929_s9 }
  0x67   : > { %1559 = vmatmul.msk.bf16.vlgmr.msra.gmra.mxu1 %vm451_vm0, %v1579_v12  ;;  %p1931_p4 = pnand %p1930_p1, %p2146_p3 }
  0x68   : > { %p1936_p9 = por %p1935_p10, %p1934_p2 }
  0x69   : > { %p1932_p8 = pneg %p1931_p4 }
  0x6b   : > { %p1937_p11 = pnand %p1936_p9, %p1932_p8 }
  0xe3   : > { %v467_v3 = vpop.f32.mrf.mxu0 }
  0xe4   : > { %v473_v6 = vsel %vm472_vm1, %v467_v3, -inf  ;;  %v558_v54 = vpop.f32.mrf.mxu1 }
  0xe5   : > { %v559_v55 = vadd.f32 %v1711_v53, %v558_v54 }
  0xe7   : > { %v1560_v56 = vmul.f32 -1.442695, %v559_v55 }
  0xeb   : > { %v469_v4 = vpop.f32.mrf.mxu0 }
  0xec   : > { %v476_v5 = vsel %vm472_vm1, %v469_v4, -inf }
  0xed   : > { %477 = vmax.xlane.f32.xlu0 %v476_v5  ;;  %v560_v5 = vpop.f32.mrf.mxu1 }
  0xf5   : > { %474 = vmax.xlane.f32.xlu0 %v473_v6  ;;  %v561_v6 = vadd.f32 %v1711_v53, %v560_v5 }
  0xf7   : > { %v1561_v9 = vmul.f32 -1.442695, %v561_v6 }
 0x160   : > { %v478_v10 = vpop.xlane.xlu0 %477 }
 0x161   : > { %v480_v15 = vsub.f32 %v469_v4, %v478_v10 }
 0x163   : > { %v483_v17 = vmul.f32 1.442695, %v480_v15 }
 0x168   : > { %v475_v13 = vpop.xlane.xlu0 %474 }
 0x169   : > { %v479_v14 = vsub.f32 %v467_v3, %v475_v13 }
 0x16b   : > { %v481_v16 = vmul.f32 1.442695, %v479_v14 }
 0x16d   : > { %1713 = vpow2.f32 %v481_v16 }
 0x16e   : > { %1715 = vpow2.f32 %v483_v17 }
 0x173   : > { %v1714_v18 = vpop.eup %1713 }
 0x174   : > { %v485_v19 = vsel %vm472_vm1, %v1714_v18, 0.0  ;;  %v1716_v20 = vpop.eup %1715 }
 0x175   : > { %486 = vadd.xlane.f32.xlu1 %v485_v19  ;;  %v488_v21 = vsel %vm472_vm1, %v1716_v20, 0.0 }
 0x17d   : > { %489 = vadd.xlane.f32.xlu1 %v488_v21 }
 0x1e8   : > { %v487_v25 = vpop.xlane.xlu1 %486 }
 0x1e9   : > { %1717 = vrcp.f32 %v487_v25  ;;  %v502_v30 = vand.u32 2147483648, %v487_v25  ;;  %v500_v32 = vand.u32 2147483647, %v487_v25  ;;  %vm496_vm3 = vweird.f32 %v487_v25 }
 0x1eb   : > { %v503_v35 = vor.u32 1.1754944e-38, %v502_v30  ;;  %vm501_vm5 = vcmp.eq.f32.partialorder %v500_v32, 8.507059e+37 }
 0x1ef   : > { %v1718_v26 = vpop.eup %1717 }
 0x1f0   : > { %v492_v27 = vmul.f32 %v1718_v26, %v487_v25  ;;  %v490_v28 = vpop.xlane.xlu1 %489  ;;  %vm497_vm2 = vweird.f32 %v1718_v26 }
 0x1f1   : > { %1719 = vrcp.f32 %v490_v28  ;;  %vm498_vm4 = vmor %vm496_vm3, %vm497_vm2  ;;  %v517_v45 = vand.u32 2147483648, %v490_v28  ;;  %vm511_vm7 = vweird.f32 %v490_v28  ;;  %v515_v46 = vand.u32 2147483647, %v490_v28 }
 0x1f2   : > { %v493_v29 = vsub.f32 1.0, %v492_v27  ;;  %1721 = vpow2.f32 %v1560_v56  ;;  %vm868_vm3 = vcmask 1041409  }
 0x1f3   : > { %v518_v48 = vor.u32 1.1754944e-38, %v517_v45  ;;  %vm516_vm9 = vcmp.eq.f32.partialorder %v515_v46, 8.507059e+37 }
 0x1f4   : > { %v494_v31 = vmul.f32 %v1718_v26, %v493_v29 }
 0x1f6   : > { %v495_v33 = vadd.f32 %v1718_v26, %v494_v31 }
 0x1f7   : > { %v1720_v34 = vpop.eup %1719 }
 0x1f8   : > { %v499_v36 = vsel %vm498_vm4, %v1718_v26, %v495_v33  ;;  %v507_v37 = vmul.f32 %v1720_v34, %v490_v28  ;;  %vm512_vm6 = vweird.f32 %v1720_v34  ;;  %v1722_v60 = vpop.eup %1721  ;;  %v630_v26 = vpop.f32.mrf.mxu2  ;;  %vm870_vm4 = vcmask 1043459  }
 0x1f9   : > { %v504_v38 = vsel %vm501_vm5, %v503_v35, %v499_v36  ;;  %vm513_vm8 = vmor %vm511_vm7, %vm512_vm6  ;;  %v569_v61 = vadd.f32 1.0, %v1722_v60  ;;  %v631_v30 = vadd.f32 %v1712_v22, %v630_v26  ;;  %vm872_vm5 = vcmask 1045509  }
 0x1fa   : > { %v2245_v39 = vmul.f32 %v1714_v18, %v504_v38  ;;  %v508_v40 = vsub.f32 1.0, %v507_v37  ;;  %vm874_vm6 = vcmask 1047559   ;;  %vm877_vm7 = vcmask 254976  }
 0x1fb   : > { %1723 = vrcp.f32 %v569_v61  ;;  %v582_v2 = vand.u32 2147483648, %v569_v61  ;;  %vm576_vm10 = vweird.f32 %v569_v61  ;;  %v580_v4 = vand.u32 2147483647, %v569_v61 }
 0x1fc   : > { %v509_v41 = vmul.f32 %v1720_v34, %v508_v40  ;;  %v652_v42 = vperm.slane %v2245_v39, 1  ;;  %v639_v43 = vperm.slane %v2245_v39, 0  ;;  %v1019_v51 = vperm.slane %v2245_v39, 4 }
 0x1fd   : > { %v1032_v57 = vperm.slane %v2245_v39, 5  ;;  %v665_v59 = vperm.slane %v2245_v39, 2  ;;  %v583_v8 = vor.u32 1.1754944e-38, %v582_v2  ;;  %vm581_vm13 = vcmp.eq.f32.partialorder %v580_v4, 8.507059e+37 }
 0x1fe   : > { %v510_v44 = vadd.f32 %v1720_v34, %v509_v41  ;;  %663 = vperm.xlu1 %1688, %v652_v42   ;;  %657 = vperm.xlu0 %1687, %v652_v42   ;;  %1725 = vpow2.f32 %v1561_v9  ;;  %v1045_v15 = vperm.slane %v2245_v39, 6  ;;  %v678_v16 = vperm.slane %v2245_v39, 3 }
 0x1ff   : > { %644 = vperm.xlu2 %1685, %v639_v43   ;;  %v1306_v27 = vperm.slane %v2245_v39, 7 }
 0x200   : > { %v514_v47 = vsel %vm513_vm8, %v1720_v34, %v510_v44  ;;  %vm965_vm8 = vcmask 779776  }
 0x201   : > { %v519_v49 = vsel %vm516_vm9, %v518_v48, %v514_v47  ;;  %v1724_v62 = vpop.eup %1723  ;;  %v632_v47 = vpop.f32.mrf.mxu2  ;;  %vm1009_vm9 = vcmask 1042176  }
 0x202   : > { %v2252_v50 = vmul.f32 %v1716_v20, %v519_v49  ;;  %v572_v1 = vmul.f32 %v1724_v62, %v569_v61  ;;  %vm577_vm11 = vweird.f32 %v1724_v62  ;;  %v2330_v49 = vld [vmem:[#allocation9] sm:$0xff]  ;;  %v633_v53 = vadd.f32 %v1712_v22, %v632_v47 }
 0x203   : > { %vm578_vm12 = vmor %vm576_vm10, %vm577_vm11 }
 0x204   : > { %v704_v52 = vperm.slane %v2252_v50, 1  ;;  %v1058_v58 = vperm.slane %v2252_v50, 4  ;;  %v1071_v63 = vperm.slane %v2252_v50, 5  ;;  %v691_v0 = vperm.slane %v2252_v50, 0  ;;  %v1726_v13 = vpop.eup %1725 }
 0x205   : > { %v573_v3 = vsub.f32 1.0, %v572_v1  ;;  %v570_v14 = vadd.f32 1.0, %v1726_v13  ;;  %v717_v18 = vperm.slane %v2252_v50, 2  ;;  %v730_v28 = vperm.slane %v2252_v50, 3 }
 0x206   : > { %1693 = vset.pattern.permute.xlu1 %v2237_v23  ;;  %1698 = vset.pattern.permute.xlu0 %v2242_v24  ;;  %v1084_v2 = vperm.slane %v2252_v50, 6  ;;  %v1319_v47 = vperm.slane %v2252_v50, 7 }
 0x207   : > { %1686 = vset.pattern.permute.xlu2 %v2242_v24  ;;  %v574_v7 = vmul.f32 %v1724_v62, %v573_v3  ;;  %1727 = vrcp.f32 %v570_v14  ;;  %v597_v21 = vand.u32 2147483648, %v570_v14  ;;  %vm591_vm14 = vweird.f32 %v570_v14  ;;  %v2354_v3 = vld [vmem:[#allocation9 + $0x8] sm:$0xff] }
 0x208   : > { %v595_v32 = vand.u32 2147483647, %v570_v14  ;;  %1729 = vtanh.f32 %v631_v30 }
 0x209   : > { %v575_v10 = vadd.f32 %v1724_v62, %v574_v7  ;;  %v598_v29 = vor.u32 1.1754944e-38, %v597_v21  ;;  %1731 = vtanh.f32 %v633_v53 }
 0x20a   : > { %vm596_vm2 = vcmp.eq.f32.partialorder %v595_v32, 8.507059e+37 }
 0x20b   : > { %v579_v11 = vsel %vm578_vm12, %v1724_v62, %v575_v10 }
 0x20c   : > { %v2281_v12 = vsel %vm581_vm13, %v583_v8, %v579_v11 }
 0x20d   : > { %1097 = vst [vmem:[#allocation1] sm:$0xff] %v2281_v12  ;;  %v1728_v17 = vpop.eup %1727  ;;  %v751_v38 = vperm.slane %v2281_v12, 0  ;;  %v745_v62 = vrot.slane %v2281_v12, 1 }
 0x20e   : > { %1024 = vperm.xlu1 %1693, %v1019_v51   ;;  %715 = vperm.xlu0 %1698, %v704_v52   ;;  %v587_v19 = vmul.f32 %v1728_v17, %v570_v14  ;;  %vm592_vm15 = vweird.f32 %v1728_v17  ;;  %v2315_v40 = vpop.eup %1729 }
 0x20f   : > { %650 = vperm.xlu2 %1686, %v639_v43   ;;  %vm593_vm1 = vmor %vm591_vm14, %vm592_vm15  ;;  %v807_v45 = vperm.slane %v2315_v40, 0  ;;  %v2342_v56 = vpop.eup %1731  ;;  %v801_v4 = vrot.slane %v2315_v40, 1 }
 0x210   : > { %v588_v20 = vsub.f32 1.0, %v587_v19 }
 0x211   : > { %v808_v10 = vperm.slane %v801_v4, 0 }
 0x212   : > { %v589_v25 = vmul.f32 %v1728_v17, %v588_v20 }
 0x214   : > { %v590_v31 = vadd.f32 %v1728_v17, %v589_v25  ;;  %v2300_v33 = vld [vmem:[#allocation1 + $0x5] ss:$9 sm:$0xff] }
 0x215   : > { %v2302_v34 = vld [vmem:[#allocation1 + $0x6] ss:$9 sm:$0xff]  ;;  %v2310_v37 = vld [vmem:[#allocation1 + $0x4] ss:$9 sm:$0xff] }
 0x216   : > { %1695 = vset.pattern.permute.xlu1 %v2242_v24  ;;  %1701 = vset.pattern.permute.xlu0 %v2237_v23  ;;  %v594_v35 = vsel %vm593_vm1, %v1728_v17, %v590_v31 }
 0x217   : > { %1689 = vset.pattern.permute.xlu2 %v2237_v23  ;;  %v2308_v36 = vsel %vm596_vm2, %v598_v29, %v594_v35  ;;  %v802_v29 = vrot.slane %v2315_v40, 2 }
 0x218   : > { %1104 = vst [vmem:[#allocation1] sm:$0xff] %v2308_v36 }
 0x219   : > { %v809_v32 = vperm.slane %v802_v29, 0 }
 0x21e   : > { %1043 = vperm.xlu1 %1695, %v1032_v57   ;;  %1063 = vperm.xlu0 %1701, %v1058_v58  }
 0x21f   : > { %670 = vperm.xlu2 %1689, %v665_v59   ;;  %v2319_v41 = vld [vmem:[#allocation1 + $0x4] ss:$9 sm:$0xff]  ;;  %v2323_v43 = vld [vmem:[#allocation1 + $0x6] ss:$9 sm:$0xff] }
 0x220   : > { %v2321_v42 = vld [vmem:[#allocation1 + $0x5] ss:$9 sm:$0xff] }
 0x221   : > { %1144 = vst [vmem:[#allocation1] sm:$0xff] %v2315_v40 }
 0x226   : > { %1696 = vset.pattern.permute.xlu1 %v2237_v23  ;;  %1704 = vset.pattern.permute.xlu0 %v2242_v24 }
 0x227   : > { %1690 = vset.pattern.permute.xlu2 %v2242_v24 }
 0x228   : > { %v2338_v55 = vld [vmem:[#allocation1 + $0x5] ss:$9 sm:$0xff] }
 0x229   : > { %v2346_v60 = vld [vmem:[#allocation1 + $0x6] ss:$9 sm:$0xff] }
 0x22e   : > { %1082 = vperm.xlu0 %1704, %v1071_v63   ;;  %696 = vperm.xlu1 %1696, %v691_v0  }
 0x22f   : > { %676 = vperm.xlu2 %1690, %v665_v59   ;;  %v2344_v59 = vld [vmem:[#allocation1 + $0x4] ss:$9 sm:$0xff] }
 0x230   : > { %1151 = vst [vmem:[#allocation1] sm:$0xff] %v2342_v56 }
 0x236   : > { %1705 = vset.pattern.permute.xlu0 %v2237_v23  ;;  %709 = vperm.xlu1 %1696, %v704_v52  }
 0x237   : > { %1691 = vset.pattern.permute.xlu2 %v2237_v23 }
 0x23e   : > { %1050 = vperm.xlu0 %1705, %v1045_v15   ;;  %1700 = vset.pattern.permute.xlu1 %v2242_v24 }
 0x23f   : > { %683 = vperm.xlu2 %1691, %v678_v16  }
 0x246   : > { %1710 = vset.pattern.permute.xlu0 %v2242_v24  ;;  %728 = vperm.xlu1 %1700, %v717_v18  }
 0x247   : > { %1692 = vset.pattern.permute.xlu2 %v2242_v24 }
 0x24e   : > { %1317 = vperm.xlu0 %1710, %v1306_v27   ;;  %741 = vperm.xlu1 %1700, %v730_v28  }
 0x24f   : > { %689 = vperm.xlu2 %1692, %v678_v16   ;;  %v746_v16 = vrot.slane %v2281_v12, 2 }
 0x251   : > { %v753_v26 = vperm.slane %v746_v16, 0 }
 0x256   : > { %1703 = vset.pattern.permute.xlu1 %v2237_v23 }
 0x257   : > { %1030 = vperm.xlu2 %1692, %v1019_v51  }
 0x259   : > { %v2325_v44 = vpop.permute.xlu2 %644 }
 0x25a   : > { %v767_v46 = vmul.f32 %v751_v38, %v2325_v44  ;;  %v823_v51 = vmul.f32 %v807_v45, %v2325_v44 }
 0x25c   : > { %v783_v48 = vsub.f32 1.0, %v767_v46 }
 0x25e   : > { %v879_v52 = vmul.f32 %v783_v48, %v2330_v49  ;;  %1076 = vperm.xlu1 %1703, %v1071_v63  }
 0x25f   : > { %1694 = vset.pattern.permute.xlu2 %v2237_v23 }
 0x260   : > { %v883_v54 = vadd.f32 %v879_v52, %v823_v51 }
 0x266   : > { %1707 = vset.pattern.permute.xlu1 %v2242_v24 }
 0x267   : > { %1037 = vperm.xlu2 %1694, %v1032_v57   ;;  %v752_v57 = vperm.slane %v745_v62, 0 }
 0x269   : > { %v2348_v61 = vpop.permute.xlu2 %650 }
 0x26a   : > { %v768_v63 = vmul.f32 %v751_v38, %v2348_v61  ;;  %v824_v5 = vmul.f32 %v807_v45, %v2348_v61 }
 0x26c   : > { %v784_v1 = vsub.f32 1.0, %v768_v63 }
 0x26e   : > { %v880_v6 = vmul.f32 %v784_v1, %v2354_v3  ;;  %1095 = vperm.xlu1 %1707, %v1084_v2  }
 0x26f   : > { %1697 = vset.pattern.permute.xlu2 %v2242_v24 }
 0x270   : > { %v658_v7 = vpop.permute.xlu0 %657  ;;  %v884_v8 = vadd.f32 %v880_v6, %v824_v5  ;;  %v664_v9 = vpop.permute.xlu1 %663 }
 0x271   : > { %v769_v11 = vmul.f32 %v752_v57, %v658_v7  ;;  %v887_v13 = vmul.f32 %v883_v54, %v658_v7  ;;  %v825_v21 = vmul.f32 %v808_v10, %v658_v7  ;;  %v770_v45 = vmul.f32 %v752_v57, %v664_v9 }
 0x272   : > { %v888_v14 = vmul.f32 %v884_v8, %v664_v9  ;;  %v1109_v7 = vperm.slane %v2300_v33, 0 }
 0x273   : > { %v785_v17 = vsub.f32 1.0, %v769_v11  ;;  %v891_v19 = vsel %vm451_vm0, %v887_v13, 0.0  ;;  %v786_v52 = vsub.f32 1.0, %v770_v45  ;;  %v803_v13 = vrot.slane %v2315_v40, 3 }
 0x274   : > { %v892_v20 = vsel %vm451_vm0, %v888_v14, 0.0  ;;  %v1108_v14 = vperm.slane %v2310_v37, 0 }
 0x275   : > { %v923_v22 = vmul.f32 %v883_v54, %v785_v17  ;;  %v2365_v25 = vadd.f32 %v892_v20, %v891_v19  ;;  %v924_v54 = vmul.f32 %v884_v8, %v786_v52  ;;  %v1156_v8 = vperm.slane %v2338_v55, 0 }
 0x276   : > { %1708 = vset.pattern.permute.xlu1 %v2237_v23  ;;  %v810_v17 = vperm.slane %v803_v13, 0 }
 0x277   : > { %702 = vperm.xlu2 %1697, %v691_v0   ;;  %v927_v30 = vadd.f32 %v923_v22, %v825_v21  ;;  %v826_v0 = vmul.f32 %v808_v10, %v664_v9  ;;  %v747_v10 = vrot.slane %v2281_v12, 3  ;;  %v1155_v22 = vperm.slane %v2344_v59, 0 }
 0x279   : > { %v671_v31 = vpop.permute.xlu2 %670  ;;  %v928_v63 = vadd.f32 %v924_v54, %v826_v0  ;;  %v754_v11 = vperm.slane %v747_v10, 0 }
 0x27a   : > { %v771_v35 = vmul.f32 %v753_v26, %v671_v31  ;;  %v931_v38 = vmul.f32 %v927_v30, %v671_v31  ;;  %v827_v48 = vmul.f32 %v809_v32, %v671_v31 }
 0x27c   : > { %v787_v46 = vsub.f32 1.0, %v771_v35  ;;  %v935_v4 = vsel %vm451_vm0, %v931_v38, 0.0 }
 0x27e   : > { %v967_v51 = vmul.f32 %v927_v30, %v787_v46  ;;  %1324 = vperm.xlu1 %1708, %v1319_v47  }
 0x27f   : > { %1699 = vset.pattern.permute.xlu2 %v2237_v23 }
 0x280   : > { %v971_v53 = vadd.f32 %v967_v51, %v827_v48  ;;  %v1025_v62 = vpop.permute.xlu1 %1024  ;;  %v2400_v51 = vpop.permute.xlu0 %715 }
 0x281   : > { %v1167_v35 = vmul.f32 %v1155_v22, %v1025_v62 }
 0x286   : > { %1311 = vperm.xlu1 %1708, %v1306_v27  }
 0x287   : > { %722 = vperm.xlu2 %1699, %v717_v18  }
 0x289   : > { %v677_v1 = vpop.permute.xlu2 %676 }
 0x28a   : > { %v932_v57 = vmul.f32 %v928_v63, %v677_v1  ;;  %v772_v20 = vmul.f32 %v753_v26, %v677_v1  ;;  %v828_v46 = vmul.f32 %v809_v32, %v677_v1 }
 0x28c   : > { %v936_v5 = vsel %vm451_vm0, %v932_v57, 0.0  ;;  %v788_v31 = vsub.f32 1.0, %v772_v20 }
 0x28d   : > { %v2381_v6 = vadd.f32 %v936_v5, %v935_v4 }
 0x28e   : > { %v968_v45 = vmul.f32 %v928_v63, %v788_v31 }
 0x28f   : > { %735 = vperm.xlu2 %1699, %v730_v28   ;;  %v1120_v28 = vmul.f32 %v1108_v14, %v1025_v62 }
 0x290   : > { %v1044_v27 = vpop.permute.xlu1 %1043  ;;  %v972_v48 = vadd.f32 %v968_v45, %v828_v46  ;;  %v2407_v32 = vpop.permute.xlu0 %1063 }
 0x291   : > { %v1123_v18 = vmul.f32 %v1109_v7, %v1044_v27  ;;  %v1170_v9 = vmul.f32 %v1156_v8, %v1044_v27  ;;  %v1132_v12 = vsub.f32 1.0, %v1120_v28 }
 0x297   : > { %1702 = vset.pattern.permute.xlu2 %v2242_v24 }
 0x299   : > { %v684_v16 = vpop.permute.xlu2 %683 }
 0x29a   : > { %v773_v19 = vmul.f32 %v754_v11, %v684_v16  ;;  %v829_v29 = vmul.f32 %v810_v17, %v684_v16  ;;  %v975_v26 = vmul.f32 %v971_v53, %v684_v16 }
 0x29c   : > { %v789_v21 = vsub.f32 1.0, %v773_v19 }
 0x29e   : > { %v1011_v30 = vmul.f32 %v971_v53, %v789_v21 }
 0x29f   : > { %1069 = vperm.xlu2 %1702, %v1058_v58   ;;  %v979_v58 = vsel %vm451_vm0, %v975_v26, 0.0 }
 0x2a0   : > { %v1015_v40 = vadd.f32 %v1011_v30, %v829_v29  ;;  %v697_v45 = vpop.permute.xlu1 %696 }
 0x2a2   : > { %v1212_v38 = vmul.f32 %v1132_v12, %v1015_v40  ;;  %v1179_v39 = vmul.f32 %v1025_v62, %v1015_v40  ;;  %v1110_v12 = vperm.slane %v2302_v34, 0 }
 0x2a4   : > { %v1216_v37 = vadd.f32 %v1212_v38, %v1167_v35  ;;  %v1183_v13 = vsel %vm451_vm0, %v1179_v39, 0.0  ;;  %v841_v39 = vmul.f32 %v697_v45, %v2330_v49 }
 0x2a7   : > { %1056 = vperm.xlu2 %1702, %v1045_v15  }
 0x2a9   : > { %v690_v59 = vpop.permute.xlu2 %689 }
 0x2aa   : > { %v774_v52 = vmul.f32 %v754_v11, %v690_v59  ;;  %v976_v54 = vmul.f32 %v972_v48, %v690_v59  ;;  %v830_v63 = vmul.f32 %v810_v17, %v690_v59  ;;  %v2415_v17 = vpop.permute.xlu0 %1082 }
 0x2ac   : > { %v790_v0 = vsub.f32 1.0, %v774_v52  ;;  %v980_v57 = vsel %vm451_vm0, %v976_v54, 0.0 }
 0x2ad   : > { %v2404_v4 = vadd.f32 %v980_v57, %v979_v58 }
 0x2ae   : > { %v1012_v5 = vmul.f32 %v972_v48, %v790_v0  ;;  %v748_v0 = vrot.slane %v2308_v36, 1 }
 0x2af   : > { %1706 = vset.pattern.permute.xlu2 %v2237_v23  ;;  %v1135_v23 = vsub.f32 1.0, %v1123_v18 }
 0x2b0   : > { %v1016_v15 = vadd.f32 %v1012_v5, %v830_v63  ;;  %v756_v5 = vperm.slane %v748_v0, 0 }
 0x2b1   : > { %v1031_v53 = vpop.permute.xlu2 %1030 }
 0x2b2   : > { %v1121_v1 = vmul.f32 %v1108_v14, %v1031_v53  ;;  %v1180_v10 = vmul.f32 %v1031_v53, %v1016_v15  ;;  %v1168_v28 = vmul.f32 %v1155_v22, %v1031_v53  ;;  %v840_v14 = vmul.f32 %v2348_v61, %v2354_v3  ;;  %v2423_v22 = vpop.permute.xlu0 %1050 }
 0x2b4   : > { %v1133_v11 = vsub.f32 1.0, %v1121_v1  ;;  %v1184_v16 = vsel %vm451_vm0, %v1180_v10, 0.0  ;;  %v844_v61 = vsel %vm451_vm0, %v840_v14, 0.0  ;;  %v804_v1 = vrot.slane %v2342_v56, 1 }
 0x2b5   : > { %v2411_v19 = vadd.f32 %v1184_v16, %v1183_v13  ;;  %v749_v13 = vrot.slane %v2308_v36, 2 }
 0x2b6   : > { %v1213_v20 = vmul.f32 %v1133_v11, %v1016_v15  ;;  %v710_v15 = vpop.permute.xlu1 %709 }
 0x2b7   : > { %1089 = vperm.xlu2 %1706, %v1084_v2   ;;  %v839_v2 = vmul.f32 %v2325_v44, %v2330_v49 }
 0x2b8   : > { %v1217_v62 = vadd.f32 %v1213_v20, %v1168_v28 }
 0x2b9   : > { %v843_v55 = vsel %vm451_vm0, %v839_v2, 0.0  ;;  %v812_v2 = vperm.slane %v804_v1, 0 }
 0x2ba   : > { %v1256_v21 = vmul.f32 %v1217_v62, %v1135_v23  ;;  %v1221_v30 = vmul.f32 %v1217_v62, %v1044_v27  ;;  %v1124_v27 = vmul.f32 %v1110_v12, %v2423_v22  ;;  %v845_v46 = vadd.f32 %v844_v61, %v843_v55 }
 0x2bb   : > { %v778_v62 = vmul.f32 %v756_v5, %v2400_v51 }
 0x2bc   : > { %v2417_v29 = vadd.f32 %v1256_v21, %v1170_v9  ;;  %v1225_v44 = vsel %vm451_vm0, %v1221_v30, 0.0  ;;  %v1136_v48 = vsub.f32 1.0, %v1124_v27  ;;  %v846_v58 = vrot.slane %v845_v46, 4 }
 0x2bd   : > { %v852_v21 = vsel %vm451_vm0, %v841_v39, 0.0  ;;  %v777_v30 = vmul.f32 %v756_v5, %v710_v15 }
 0x2be   : > { %v847_v50 = vadd.f32 %v846_v58, %v845_v46  ;;  %v834_v46 = vmul.f32 %v812_v2, %v2400_v51 }
 0x2bf   : > { %1709 = vset.pattern.permute.xlu2 %v2242_v24  ;;  %v755_v24 = vperm.slane %v2308_v36, 0 }
 0x2c0   : > { %v848_v20 = vrot.slane %v847_v50, 2 }
 0x2c1   : > { %v1038_v31 = vpop.permute.xlu2 %1037  ;;  %v775_v26 = vmul.f32 %v755_v24, %v697_v45 }
 0x2c2   : > { %v1122_v18 = vmul.f32 %v1109_v7, %v1038_v31  ;;  %v1169_v9 = vmul.f32 %v1156_v8, %v1038_v31  ;;  %v1220_v40 = vmul.f32 %v1216_v37, %v1038_v31  ;;  %v1157_v7 = vperm.slane %v2346_v60, 0 }
 0x2c3   : > { %v791_v57 = vsub.f32 1.0, %v775_v26 }
 0x2c4   : > { %v1134_v35 = vsub.f32 1.0, %v1122_v18  ;;  %v1224_v38 = vsel %vm451_vm0, %v1220_v40, 0.0  ;;  %v1171_v52 = vmul.f32 %v1157_v7, %v2423_v22 }
 0x2c5   : > { %v2438_v33 = vadd.f32 %v1225_v44, %v1224_v38  ;;  %v881_v53 = vmul.f32 %v791_v57, %v2330_v49  ;;  %v794_v44 = vsub.f32 1.0, %v778_v62 }
 0x2c6   : > { %v1255_v8 = vmul.f32 %v1216_v37, %v1134_v35  ;;  %v811_v37 = vperm.slane %v2342_v56, 0  ;;  %v938_v35 = vrot.slane %v2381_v6, 4 }
 0x2c7   : > { %1330 = vperm.xlu2 %1709, %v1319_v47   ;;  %v894_v47 = vrot.slane %v2365_v25, 4 }
 0x2c8   : > { %v2444_v59 = vadd.f32 %v1255_v8, %v1169_v9  ;;  %v831_v11 = vmul.f32 %v811_v37, %v697_v45  ;;  %v757_v9 = vperm.slane %v749_v13, 0  ;;  %v793_v45 = vsub.f32 1.0, %v777_v30 }
 0x2c9   : > { %v895_v23 = vadd.f32 %v894_v47, %v2365_v25  ;;  %v729_v25 = vpop.permute.xlu1 %728  ;;  %v939_v57 = vadd.f32 %v938_v35, %v2381_v6 }
 0x2ca   : > { %v1298_v54 = vmul.f32 %v2444_v59, %v1136_v48  ;;  %v885_v14 = vadd.f32 %v881_v53, %v831_v11  ;;  %v805_v48 = vrot.slane %v2342_v56, 2  ;;  %v833_v11 = vmul.f32 %v812_v2, %v710_v15 }
 0x2cb   : > { %v896_v27 = vrot.slane %v895_v23, 2  ;;  %v940_v62 = vrot.slane %v939_v57, 2 }
 0x2cc   : > { %v2451_v63 = vadd.f32 %v1298_v54, %v1171_v52  ;;  %v889_v55 = vmul.f32 %v885_v14, %v710_v15  ;;  %v780_v52 = vmul.f32 %v757_v9, %v729_v25  ;;  %v925_v47 = vmul.f32 %v885_v14, %v793_v45 }
 0x2cd   : > { %v897_v0 = vadd.f32 %v896_v27, %v895_v23  ;;  %v813_v13 = vperm.slane %v805_v48, 0  ;;  %v750_v14 = vrot.slane %v2308_v36, 3  ;;  %v982_v48 = vrot.slane %v2404_v4, 4 }
 0x2d1   : > { %v703_v10 = vpop.permute.xlu2 %702  ;;  %v2475_v2 = vpop.permute.xlu1 %741 }
 0x2d2   : > { %v776_v16 = vmul.f32 %v755_v24, %v703_v10  ;;  %v842_v28 = vmul.f32 %v703_v10, %v2354_v3  ;;  %v832_v40 = vmul.f32 %v811_v37, %v703_v10  ;;  %v849_v24 = vadd.f32 %v848_v20, %v847_v50 }
 0x2d3   : > { %v900_v50 = vsel %vm451_vm0, %v889_v55, 0.0  ;;  %v1111_v10 = vperm.slane %v2319_v41, 0 }
 0x2d4   : > { %v792_v31 = vsub.f32 1.0, %v776_v16  ;;  %v853_v49 = vsel %vm451_vm0, %v842_v28, 0.0  ;;  %v796_v16 = vsub.f32 1.0, %v780_v52  ;;  %v898_v28 = vrot.slane %v897_v0, 1 }
 0x2d5   : > { %v854_v18 = vadd.f32 %v853_v49, %v852_v21  ;;  %v929_v21 = vadd.f32 %v925_v47, %v833_v11 }
 0x2d6   : > { %v882_v61 = vmul.f32 %v792_v31, %v2354_v3  ;;  %v850_v3 = vrot.slane %v849_v24, 1  ;;  %v806_v31 = vrot.slane %v2342_v56, 3 }
 0x2d7   : > { %v855_v38 = vrot.slane %v854_v18, 4 }
 0x2d8   : > { %v886_v8 = vadd.f32 %v882_v61, %v832_v40  ;;  %v836_v61 = vmul.f32 %v813_v13, %v729_v25 }
 0x2d9   : > { %v856_v26 = vadd.f32 %v855_v38, %v854_v18 }
 0x2da   : > { %v890_v54 = vmul.f32 %v886_v8, %v2400_v51  ;;  %v926_v58 = vmul.f32 %v886_v8, %v794_v44  ;;  %v851_v51 = vadd.f32 %v850_v3, %v849_v24  ;;  %v758_v3 = vperm.slane %v750_v14, 0 }
 0x2db   : > { %v857_v37 = vrot.slane %v856_v26, 2 }
 0x2dc   : > { %v901_v5 = vsel %vm451_vm0, %v890_v54, 0.0  ;;  %v930_v39 = vadd.f32 %v926_v58, %v834_v46 }
 0x2dd   : > { %v858_v53 = vadd.f32 %v857_v37, %v856_v26  ;;  %v902_v1 = vadd.f32 %v901_v5, %v900_v50  ;;  %v941_v5 = vadd.f32 %v940_v62, %v939_v57 }
 0x2de   : > { %v970_v6 = vmul.f32 %v930_v39, %v796_v16  ;;  %v934_v30 = vmul.f32 %v930_v39, %v729_v25  ;;  %v2482_v25 = vld [vmem:[#allocation1 + $0x4] ss:$9 sm:$0xff]  ;;  %v1112_v16 = vperm.slane %v2321_v42, 0 }
 0x2df   : > { %v859_v20 = vrot.slane %v858_v53, 1  ;;  %v903_v23 = vrot.slane %v902_v1, 4  ;;  %v1158_v39 = vperm.slane %v2482_v25, 0 }
 0x2e0   : > { %v945_v36 = vsel %vm451_vm0, %v934_v30, 0.0  ;;  %v2479_v45 = vadd.f32 %v970_v6, %v836_v61  ;;  %v983_v6 = vadd.f32 %v982_v48, %v2404_v4  ;;  %v814_v30 = vperm.slane %v806_v31, 0 }
 0x2e1   : > { %v860_v49 = vadd.f32 %v859_v20, %v858_v53  ;;  %v904_v18 = vadd.f32 %v903_v23, %v902_v1  ;;  %v723_v40 = vpop.permute.xlu2 %722  ;;  %v1126_v23 = vmul.f32 %v1111_v10, %v2407_v32 }
 0x2e2   : > { %v779_v27 = vmul.f32 %v757_v9, %v723_v40  ;;  %v933_v15 = vmul.f32 %v929_v21, %v723_v40  ;;  %v835_v8 = vmul.f32 %v813_v13, %v723_v40  ;;  %v978_v50 = vmul.f32 %v2479_v45, %v2475_v2 }
 0x2e3   : > { %v867_v24 = vrot.slane %v860_v49, 7  ;;  %v905_v35 = vrot.slane %v904_v18, 2  ;;  %v899_v13 = vadd.f32 %v898_v28, %v897_v0  ;;  %v942_v28 = vrot.slane %v941_v5, 1 }
 0x2e4   : > { %v795_v38 = vsub.f32 1.0, %v779_v27  ;;  %v944_v44 = vsel %vm451_vm0, %v933_v15, 0.0  ;;  %v989_v0 = vsel %vm451_vm0, %v978_v50, 0.0  ;;  %v782_v27 = vmul.f32 %v758_v3, %v2475_v2 }
 0x2e5   : > { %v946_v56 = vadd.f32 %v945_v36, %v944_v44  ;;  %v906_v55 = vadd.f32 %v905_v35, %v904_v18  ;;  %v869_v9 = vsel %vm868_vm3, %v867_v24, %v851_v51  ;;  %v984_v35 = vrot.slane %v983_v6, 2 }
 0x2e6   : > { %v969_v46 = vmul.f32 %v929_v21, %v795_v38  ;;  %v871_v26 = vsel %vm870_vm4, %v867_v24, %v869_v9  ;;  %v2497_v21 = vpop.permute.xlu1 %1076  ;;  %v1138_v36 = vsub.f32 1.0, %v1126_v23  ;;  %v798_v48 = vsub.f32 1.0, %v782_v27 }
 0x2e7   : > { %v947_v52 = vrot.slane %v946_v56, 4  ;;  %v907_v54 = vrot.slane %v906_v55, 1  ;;  %v873_v58 = vsel %vm872_vm5, %v867_v24, %v871_v26  ;;  %v1173_v26 = vmul.f32 %v1158_v39, %v2407_v32 }
 0x2e8   : > { %v973_v37 = vadd.f32 %v969_v46, %v835_v8  ;;  %v875_v47 = vsel %vm874_vm6, %v867_v24, %v873_v58  ;;  %v985_v58 = vadd.f32 %v984_v35, %v983_v6 }
 0x2e9   : > { %v948_v53 = vadd.f32 %v947_v52, %v946_v56  ;;  %v736_v1 = vpop.permute.xlu2 %735  ;;  %v908_v11 = vadd.f32 %v907_v54, %v906_v55  ;;  %878 = vst.msk [vmem:[#allocation2] sm:$0x3] %vm877_vm7, %v875_v47  ;;  %v1128_v56 = vmul.f32 %v1112_v16, %v2497_v21  ;;  %v943_v54 = vadd.f32 %v942_v28, %v941_v5 }
 0x2ea   : > { %v781_v51 = vmul.f32 %v758_v3, %v736_v1  ;;  %v977_v20 = vmul.f32 %v973_v37, %v736_v1  ;;  %v837_v15 = vmul.f32 %v814_v30, %v736_v1  ;;  %v1186_v5 = vrot.slane %v2411_v19, 4 }
 0x2eb   : > { %v949_v57 = vrot.slane %v948_v53, 2  ;;  %v913_v62 = vrot.slane %v908_v11, 7  ;;  %v1140_v47 = vsub.f32 1.0, %v1128_v56 }
 0x2ec   : > { %v797_v14 = vsub.f32 1.0, %v781_v51  ;;  %v988_v49 = vsel %vm451_vm0, %v977_v20, 0.0  ;;  %v838_v51 = vmul.f32 %v814_v30, %v2475_v2 }
 0x2ed   : > { %v950_v18 = vadd.f32 %v949_v57, %v948_v53  ;;  %v990_v40 = vadd.f32 %v989_v0, %v988_v49  ;;  %v914_v61 = vsel %vm868_vm3, %v913_v62, %v899_v13  ;;  %v1014_v53 = vmul.f32 %v2479_v45, %v798_v48 }
 0x2ee   : > { %v1013_v24 = vmul.f32 %v973_v37, %v797_v14  ;;  %v915_v4 = vsel %vm870_vm4, %v913_v62, %v914_v61  ;;  %v2513_v3 = vpop.permute.xlu1 %1095  ;;  %v986_v57 = vrot.slane %v985_v58, 1 }
 0x2ef   : > { %v991_v38 = vrot.slane %v990_v40, 4  ;;  %v916_v31 = vsel %vm872_vm5, %v913_v62, %v915_v4  ;;  %v951_v44 = vrot.slane %v950_v18, 1  ;;  %v1018_v49 = vadd.f32 %v1014_v53, %v838_v51 }
 0x2f0   : > { %v1017_v55 = vadd.f32 %v1013_v24, %v837_v15  ;;  %v917_v9 = vsel %vm874_vm6, %v913_v62, %v916_v31 }
 0x2f1   : > { %v992_v8 = vadd.f32 %v991_v38, %v990_v40  ;;  %918 = vrot.lane.b32.xlu2 %v917_v9, %s2005_s23  ;;  %v952_v46 = vadd.f32 %v951_v44, %v950_v18  ;;  %v987_v18 = vadd.f32 %v986_v57, %v985_v58  ;;  %v1187_v40 = vadd.f32 %v1186_v5, %v2411_v19 }
 0x2f2   : > { %v1214_v52 = vmul.f32 %v1138_v36, %v1017_v55  ;;  %v1181_v14 = vmul.f32 %v2407_v32, %v1017_v55  ;;  %v1129_v32 = vmul.f32 %v1112_v16, %v2415_v17  ;;  %v1227_v44 = vrot.slane %v2438_v33, 4 }
 0x2f3   : > { %v993_v37 = vrot.slane %v992_v8, 2  ;;  %v957_v50 = vrot.slane %v952_v46, 7  ;;  %v1188_v31 = vrot.slane %v1187_v40, 2 }
 0x2f4   : > { %v1218_v1 = vadd.f32 %v1214_v52, %v1173_v26  ;;  %v1192_v24 = vsel %vm451_vm0, %v1181_v14, 0.0  ;;  %v1141_v16 = vsub.f32 1.0, %v1129_v32  ;;  %v1153_v52 = vld [vmem:[#allocation1 + $0x5] ss:$9 sm:$0xff]  ;;  %v1228_v58 = vadd.f32 %v1227_v44, %v2438_v33 }
 0x2f5   : > { %v994_v11 = vadd.f32 %v993_v37, %v992_v8  ;;  %v958_v13 = vsel %vm868_vm3, %v957_v50, %v943_v54  ;;  %v1263_v8 = vmul.f32 %v2444_v59, %v2423_v22  ;;  %v1189_v54 = vadd.f32 %v1188_v31, %v1187_v40 }
 0x2f6   : > { %v959_v20 = vsel %vm870_vm4, %v957_v50, %v958_v13  ;;  %v2519_v23 = vmul.f32 %v1218_v1, %v1140_v47  ;;  %v2529_v61 = vpop.permute.xlu1 %1324  ;;  %v1222_v9 = vmul.f32 %v1218_v1, %v2497_v21  ;;  %v1229_v5 = vrot.slane %v1228_v58, 2 }
 0x2f7   : > { %v960_v6 = vsel %vm872_vm5, %v957_v50, %v959_v20  ;;  %v995_v62 = vrot.slane %v994_v11, 1  ;;  %v1190_v57 = vrot.slane %v1189_v54, 1 }
 0x2f8   : > { %v961_v45 = vsel %vm874_vm6, %v957_v50, %v960_v6  ;;  %v1233_v47 = vsel %vm451_vm0, %v1222_v9, 0.0  ;;  %v1230_v40 = vadd.f32 %v1229_v5, %v1228_v58 }
 0x2f9   : > { %v1070_v0 = vpop.permute.xlu2 %1069  ;;  %962 = vrot.lane.b32.xlu2 %v961_v45, %s2006_s25  ;;  %v996_v2 = vadd.f32 %v995_v62, %v994_v11  ;;  %v1267_v11 = vsel %vm451_vm0, %v1263_v8, 0.0  ;;  %v1318_v45 = vpop.permute.xlu0 %1317 }
 0x2fa   : > { %v1127_v30 = vmul.f32 %v1111_v10, %v1070_v0  ;;  %v1182_v28 = vmul.f32 %v1070_v0, %v1018_v49  ;;  %v1174_v10 = vmul.f32 %v1158_v39, %v1070_v0 }
 0x2fb   : > { %v1001_v27 = vrot.slane %v996_v2, 7 }
 0x2fc   : > { %v1139_v15 = vsub.f32 1.0, %v1127_v30  ;;  %v1193_v4 = vsel %vm451_vm0, %v1182_v28, 0.0 }
 0x2fd   : > { %v1194_v35 = vadd.f32 %v1193_v4, %v1192_v24  ;;  %v1002_v41 = vsel %vm868_vm3, %v1001_v27, %v987_v18  ;;  %v1191_v18 = vadd.f32 %v1190_v57, %v1189_v54 }
 0x2fe   : > { %v1215_v38 = vmul.f32 %v1139_v15, %v1018_v49  ;;  %v1003_v19 = vsel %vm870_vm4, %v1001_v27, %v1002_v41  ;;  %v1312_v1 = vpop.permute.xlu1 %1311  ;;  %v1231_v41 = vrot.slane %v1230_v40, 1 }
 0x2ff   : > { %v1195_v36 = vrot.slane %v1194_v35, 4  ;;  %v1004_v42 = vsel %vm872_vm5, %v1001_v27, %v1003_v19  ;;  %v1332_v14 = vmul.f32 %v1312_v1, %v2451_v63  ;;  %v1113_v19 = vperm.slane %v2323_v43, 0 }
 0x300   : > { %v1219_v56 = vadd.f32 %v1215_v38, %v1174_v10  ;;  %v1005_v55 = vsel %vm874_vm6, %v1001_v27, %v1004_v42 }
 0x301   : > { %v1196_v25 = vadd.f32 %v1195_v36, %v1194_v35  ;;  %v1057_v39 = vpop.permute.xlu2 %1056  ;;  %1006 = vrot.lane.b32.xlu0 %v1005_v55, %s2007_s26  ;;  %v1232_v55 = vadd.f32 %v1231_v41, %v1230_v40 }
 0x302   : > { %v1223_v46 = vmul.f32 %v1219_v56, %v2415_v17  ;;  %v1258_v26 = vmul.f32 %v1219_v56, %v1141_v16  ;;  %v1125_v48 = vmul.f32 %v1110_v12, %v1057_v39  ;;  %v1264_v50 = vmul.f32 %v2417_v29, %v1057_v39 }
 0x303   : > { %v1197_v37 = vrot.slane %v1196_v25, 2  ;;  %v1159_v12 = vperm.slane %v1153_v52, 0  ;;  %v1172_v51 = vmul.f32 %v1157_v7, %v1057_v39 }
 0x304   : > { %v1234_v22 = vsel %vm451_vm0, %v1223_v46, 0.0  ;;  %v1137_v59 = vsub.f32 1.0, %v1125_v48  ;;  %v1268_v13 = vsel %vm451_vm0, %v1264_v50, 0.0  ;;  %v1154_v46 = vld [vmem:[#allocation1 + $0x6] ss:$9 sm:$0xff]  ;;  %v1131_v48 = vmul.f32 %v1113_v19, %v2513_v3 }
 0x305   : > { %v1198_v53 = vadd.f32 %v1197_v37, %v1196_v25  ;;  %v1235_v34 = vadd.f32 %v1234_v22, %v1233_v47  ;;  %v1269_v33 = vadd.f32 %v1268_v13, %v1267_v11  ;;  %v1176_v30 = vmul.f32 %v1159_v12, %v2415_v17 }
 0x306   : > { %v1299_v20 = vmul.f32 %v2417_v29, %v1137_v59  ;;  %v1336_v29 = vsel %vm451_vm0, %v1332_v14, 0.0  ;;  %v1175_v4 = vmul.f32 %v1159_v12, %v2497_v21  ;;  %v1160_v50 = vperm.slane %v1154_v46, 0 }
 0x307   : > { %v1199_v6 = vrot.slane %v1198_v53, 1  ;;  %v1236_v62 = vrot.slane %v1235_v34, 4  ;;  %v1262_v27 = vadd.f32 %v1258_v26, %v1176_v30  ;;  %v1270_v17 = vrot.slane %v1269_v33, 4 }
 0x308   : > { %v1303_v49 = vadd.f32 %v1299_v20, %v1172_v51  ;;  %v1261_v31 = vadd.f32 %v2519_v23, %v1175_v4 }
 0x309   : > { %v1200_v0 = vadd.f32 %v1199_v6, %v1198_v53  ;;  %v1237_v2 = vadd.f32 %v1236_v62, %v1235_v34  ;;  %v1266_v44 = vmul.f32 %v1262_v27, %v2513_v3  ;;  %v1271_v9 = vadd.f32 %v1270_v17, %v1269_v33 }
 0x30a   : > { %v1333_v28 = vmul.f32 %v1318_v45, %v1303_v49  ;;  %v1143_v53 = vsub.f32 1.0, %v1131_v48  ;;  %v1178_v33 = vmul.f32 %v1160_v50, %v2513_v3 }
 0x30b   : > { %v1205_v60 = vrot.slane %v1200_v0, 7  ;;  %v1238_v7 = vrot.slane %v1237_v2, 2  ;;  %v1277_v43 = vsel %vm451_vm0, %v1266_v44, 0.0  ;;  %v1272_v54 = vrot.slane %v1271_v9, 2 }
 0x30c   : > { %v1337_v32 = vsel %vm451_vm0, %v1333_v28, 0.0  ;;  %v1301_v12 = vmul.f32 %v1262_v27, %v1143_v53 }
 0x30d   : > { %v1338_v15 = vadd.f32 %v1337_v32, %v1336_v29  ;;  %v1239_v24 = vadd.f32 %v1238_v7, %v1237_v2  ;;  %v1206_v63 = vsel %vm868_vm3, %v1205_v60, %v1191_v18  ;;  %v1273_v11 = vadd.f32 %v1272_v54, %v1271_v9 }
 0x30e   : > { %v1207_v35 = vsel %vm870_vm4, %v1205_v60, %v1206_v63  ;;  %v1305_v6 = vadd.f32 %v1301_v12, %v1178_v33 }
 0x30f   : > { %v1240_v10 = vrot.slane %v1239_v24, 1  ;;  %v1208_v38 = vsel %vm872_vm5, %v1205_v60, %v1207_v35  ;;  %v1274_v20 = vrot.slane %v1273_v11, 1  ;;  %v1339_v57 = vrot.slane %v1338_v15, 4 }
 0x310   : > { %v1209_v36 = vsel %vm874_vm6, %v1205_v60, %v1208_v38 }
 0x311   : > { %v1090_v42 = vpop.permute.xlu2 %1089  ;;  %v1241_v16 = vadd.f32 %v1240_v10, %v1239_v24  ;;  %1211 = vst.msk [vmem:[#allocation2 + $0x2] sm:$0x3] %vm877_vm7, %v1209_v36  ;;  %v1275_v0 = vadd.f32 %v1274_v20, %v1273_v11  ;;  %v1340_v2 = vadd.f32 %v1339_v57, %v1338_v15 }
 0x312   : > { %v1130_v21 = vmul.f32 %v1113_v19, %v1090_v42  ;;  %v1265_v56 = vmul.f32 %v1261_v31, %v1090_v42  ;;  %v1177_v1 = vmul.f32 %v1160_v50, %v1090_v42 }
 0x313   : > { %v1246_v8 = vrot.slane %v1241_v16, 7  ;;  %v1341_v7 = vrot.slane %v1340_v2, 2 }
 0x314   : > { %v1142_v25 = vsub.f32 1.0, %v1130_v21  ;;  %v1276_v39 = vsel %vm451_vm0, %v1265_v56, 0.0 }
 0x315   : > { %v1278_v23 = vadd.f32 %v1277_v43, %v1276_v39  ;;  %v1247_v26 = vsel %vm868_vm3, %v1246_v8, %v1232_v55  ;;  %v1342_v15 = vadd.f32 %v1341_v7, %v1340_v2 }
 0x316   : > { %v1248_v52 = vsel %vm870_vm4, %v1246_v8, %v1247_v26  ;;  %v1300_v22 = vmul.f32 %v1261_v31, %v1142_v25 }
 0x317   : > { %v1279_v58 = vrot.slane %v1278_v23, 4  ;;  %v1249_v37 = vsel %vm872_vm5, %v1246_v8, %v1248_v52  ;;  %v1343_v35 = vrot.slane %v1342_v15, 1 }
 0x318   : > { %v1250_v59 = vsel %vm874_vm6, %v1246_v8, %v1249_v37  ;;  %v1304_v34 = vadd.f32 %v1300_v22, %v1177_v1 }
 0x319   : > { %v1280_v47 = vadd.f32 %v1279_v58, %v1278_v23  ;;  %1251 = vrot.lane.b32.xlu1 %v1250_v59, %s2005_s23  ;;  %v1344_v17 = vadd.f32 %v1343_v35, %v1342_v15 }
 0x31a   : > { %v1334_v62 = vmul.f32 %v2529_v61, %v1304_v34 }
 0x31b   : > { %v1281_v13 = vrot.slane %v1280_v47, 2 }
 0x31c   : > { %v1345_v28 = vsel %vm451_vm0, %v1334_v62, 0.0 }
 0x31d   : > { %v1282_v51 = vadd.f32 %v1281_v13, %v1280_v47 }
 0x31f   : > { %v1283_v5 = vrot.slane %v1282_v51, 1 }
 0x321   : > { %v1331_v14 = vpop.permute.xlu2 %1330  ;;  %v1284_v49 = vadd.f32 %v1283_v5, %v1282_v51 }
 0x322   : > { %v1335_v45 = vmul.f32 %v1331_v14, %v1305_v6 }
 0x323   : > { %v1289_v30 = vrot.slane %v1284_v49, 7 }
 0x324   : > { %v1346_v18 = vsel %vm451_vm0, %v1335_v45, 0.0  ;;  %vm921_vm0 = vcmask 517376  }
 0x325   : > { %v1347_v40 = vadd.f32 %v1346_v18, %v1345_v28  ;;  %v1290_v60 = vsel %vm868_vm3, %v1289_v30, %v1275_v0 }
 0x326   : > { %v1291_v3 = vsel %vm870_vm4, %v1289_v30, %v1290_v60 }
 0x327   : > { %v1348_v27 = vrot.slane %v1347_v40, 4  ;;  %v1292_v29 = vsel %vm872_vm5, %v1289_v30, %v1291_v3 }
 0x328   : > { %v1293_v61 = vsel %vm874_vm6, %v1289_v30, %v1292_v29 }
 0x329   : > { %v1349_v32 = vadd.f32 %v1348_v27, %v1347_v40  ;;  %1294 = vrot.lane.b32.xlu1 %v1293_v61, %s2006_s25 }
 0x32b   : > { %v1350_v24 = vrot.slane %v1349_v32, 2 }
 0x32d   : > { %v1351_v63 = vadd.f32 %v1350_v24, %v1349_v32 }
 0x32f   : > { %v1352_v4 = vrot.slane %v1351_v63, 1 }
 0x331   : > { %v1353_v41 = vadd.f32 %v1352_v4, %v1351_v63 }
 0x333   : > { %v1358_v10 = vrot.slane %v1353_v41, 7 }
 0x335   : > { %v1359_v38 = vsel %vm868_vm3, %v1358_v10, %v1344_v17 }
 0x336   : > { %v1360_v19 = vsel %vm870_vm4, %v1358_v10, %v1359_v38 }
 0x337   : > { %v1361_v31 = vsel %vm872_vm5, %v1358_v10, %v1360_v19 }
 0x338   : > { %v1362_v44 = vsel %vm874_vm6, %v1358_v10, %v1361_v31 }
 0x339   : > { %1363 = vrot.lane.b32.xlu2 %v1362_v44, %s2007_s26 }
 0x34b   : > { %v919_v36 = vpop.permute.xlu2 %918 }
 0x34c   : > { %922 = vst.msk [vmem:[#allocation2] sm:$0x3] %vm921_vm0, %v919_v36 }
 0x353   : > { %v963_v42 = vpop.permute.xlu2 %962 }
 0x354   : > { %966 = vst.msk [vmem:[#allocation2] sm:$0x3] %vm965_vm8, %v963_v42 }
 0x373   : > { %v1007_v16 = vpop.permute.xlu0 %1006 }
 0x374   : > { %1010 = vst.msk [vmem:[#allocation2] sm:$0x3] %vm1009_vm9, %v1007_v16 }
 0x38b   : > { %v1252_v21 = vpop.permute.xlu1 %1251 }
 0x38c   : > { %1254 = vst.msk [vmem:[#allocation2 + $0x2] sm:$0x3] %vm921_vm0, %v1252_v21 }
 0x393   : > { %v1364_v55 = vpop.permute.xlu2 %1363 }
 0x39b   : > { %v1295_v56 = vpop.permute.xlu1 %1294 }
 0x39c   : > { %1297 = vst.msk [vmem:[#allocation2 + $0x2] sm:$0x3] %vm965_vm8, %v1295_v56 }
 0x39d   : > { %1366 = vst.msk [vmem:[#allocation2 + $0x2] sm:$0x3] %vm1009_vm9, %v1364_v55 }
 0x3a4   : > { %v1367_v9 = vld [vmem:[#allocation2] sm:$0xf] }
 0x3a5   : > { %1368 = vst [vmem:[%s433_s24] sm:$0xf] %v1367_v9 }
 0x3a6   : > { %1940 = shalt.err (!%p1937_p11)
}
 0x3a7   : > { %1606 = dma.vmem_to_hbm [thread:$0]  (%p2146_p3), %s1384_s0, 64, %s1386_s18, %s1370_s17  }
 0x3a8 PF: > { %s1397_s15 = sand.u32 1, %s1983_s27   ;;  %p2662_p12 = scmp.ge.s32.totalorder %s1995_s30, 2 }
 0x3a9   : > { %s1398_s19 = scalar_lea.sflag [#allocation5], %s1397_s15 }
 0x3aa   : > { %p1629_p13 = pnand %p2662_p12, %p2088_p6 }
 0x3ac   : > { %p1630_p0 = pneg %p1629_p13 }
 0x3ae   : > { %1978 = dma.done.wait (%p1630_p0), %s1398_s19, 64  }
 0x3af   : > { %1980 = vsyncadd (%p1630_p0), %s1398_s19, 4294967232  ;;  %s2663_s23 = sld [smem:[#allocation21_spill]]  ;;  %p26_p5 = scmp.ge.s32.totalorder %s2136_s13, 4  }
 0x3b0   : > { %s2664_s29 = sld [smem:[#allocation22_spill]]  ;;  %s2665_s27 = smov %s1987_s28 }
 0x3b1   : > { %s2667_s30 = smov %s2136_s13  ;;  %28 = sbr.rel (!%p26_p5) target bundleno = 15 (0xf), region = 132 }
 0x3b5   : > { %s2666_s28 = smov %s2663_s23 }
 0x3b6   :  { %1404 = vsyncpa [#allocation4], 1 }
 0x3b7   :  { %1406 = vsyncpa [#allocation4 + $0x1], 1 }
 0x3b8   :  { %1407 = vsyncpa [#allocation7], 1 }
 0x3b9   :  { %1409 = vsyncpa [#allocation7 + $0x1], 1 }
 0x3ba   :  { %1410 = vsyncpa [#allocation10], 1 }
 0x3bb   :  { %1411 = vsyncpa [#allocation13], 1 }
 0x3bc   :  { %1412 = vsyncpa [#allocation5], 1 }
 0x3bd   :  { %1414 = vsyncpa [#allocation5 + $0x1], 1 }

</bundles_post_ra>
